<compile_context>
chip_gen: v5e
topology: v5e:2x2
jax: 0.10.0
libtpu: 0.0.40
codegen_flags: <defaults>
</compile_context>

<pallas_src>
import math
import functools

import jax
import jax.numpy as jnp
from jax.experimental import pallas as pl
from jax.experimental.pallas import tpu as pltpu


# ------------------------- helpers -------------------------

def _round_up(x, m):
    return ((x + m - 1) // m) * m


def _pick_tile_128(padded, cap):
    """Largest multiple of 128 that divides `padded` and is <= cap."""
    t = padded // 128
    for d in range(min(t, cap // 128), 0, -1):
        if padded % (128 * d) == 0:
            return 128 * d
    return 128


# ------------------------- Pallas kernels -------------------------

def _conv_mm_kernel(a_ref, b_ref, bias_ref, o_ref, acc_ref, *, relu):
    """bf16 A(TM,TK) @ bf16 B(TK,TN) accumulated in f32 scratch; bias(+ReLU) epilogue."""
    k = pl.program_id(2)

    @pl.when(k == 0)
    def _():
        acc_ref[...] = jnp.zeros_like(acc_ref)

    acc_ref[...] += jnp.dot(a_ref[...], b_ref[...],
                            preferred_element_type=jnp.float32)

    @pl.when(k == pl.num_programs(2) - 1)
    def _():
        r = acc_ref[...] + bias_ref[...]
        if relu:
            r = jnp.maximum(r, 0.0)
        o_ref[...] = r.astype(o_ref.dtype)


def _conv_mm_res_kernel(a_ref, b_ref, bias_ref, r_ref, o_ref, acc_ref):
    """Same as above but fuses residual add + ReLU (BasicBlock tail)."""
    k = pl.program_id(2)

    @pl.when(k == 0)
    def _():
        acc_ref[...] = jnp.zeros_like(acc_ref)

    acc_ref[...] += jnp.dot(a_ref[...], b_ref[...],
                            preferred_element_type=jnp.float32)

    @pl.when(k == pl.num_programs(2) - 1)
    def _():
        r = acc_ref[...] + bias_ref[...] + r_ref[...].astype(jnp.float32)
        o_ref[...] = jnp.maximum(r, 0.0).astype(o_ref.dtype)


def _pool_fc_kernel(x_ref, w_ref, b_ref, f_ref, o_ref):
    """Fused global avg-pool + Linear + frame_num add."""
    feats = x_ref[...].astype(jnp.float32)          # (N, L, C)
    pooled = jnp.mean(feats, axis=1)                # (N, C)  AdaptiveAvgPool3d((1,1,1))
    acc = jnp.dot(pooled, w_ref[...], preferred_element_type=jnp.float32)
    o_ref[...] = acc + b_ref[...] + f_ref[0, 0]


# ------------------------- Pallas wrappers -------------------------

def conv_matmul(cols, wmat, bias, *, relu, residual=None, out_dtype=jnp.bfloat16):
    """(M,K) @ (K,N) + bias [+ residual] [+ ReLU], K-tiled with f32 VMEM accumulator.

    Inputs are cast to bf16; K / N are zero-padded to multiples of 128 and M to the
    M-tile.  Returns the (M_pad, N_pad) result; caller slices back to (M, N).
    """
    M, K = cols.shape
    Kw, Ncout = wmat.shape
    assert K == Kw

    K_pad = _round_up(K, 128)
    N_pad = _round_up(Ncout, 128)
    TM = min(512, _round_up(M, 8))
    M_pad = _round_up(M, TM)
    TK = _pick_tile_128(K_pad, 1024)
    TN = _pick_tile_128(N_pad, 256)

    a = jnp.pad(cols.astype(jnp.bfloat16), ((0, M_pad - M), (0, K_pad - K)))
    b = jnp.pad(wmat.astype(jnp.bfloat16), ((0, K_pad - K), (0, N_pad - Ncout)))
    bias_p = jnp.pad(bias.astype(jnp.float32), ((0, 0), (0, N_pad - Ncout)))

    grid = (M_pad // TM, N_pad // TN, K_pad // TK)
    base_in_specs = [
        pl.BlockSpec((TM, TK), lambda i, j, k: (i, k)),
        pl.BlockSpec((TK, TN), lambda i, j, k: (k, j)),
        pl.BlockSpec((1, TN), lambda i, j, k: (0, j)),
    ]
    out_spec = pl.BlockSpec((TM, TN), lambda i, j, k: (i, j))
    scratch = [pltpu.VMEM((TM, TN), jnp.float32)]
    cparams = pltpu.CompilerParams(
        dimension_semantics=("parallel", "parallel", "arbitrary"))

    if residual is not None:
        r = jnp.pad(residual.astype(jnp.bfloat16),
                    ((0, M_pad - M), (0, N_pad - Ncout)))
        return pl.pallas_call(
            _conv_mm_res_kernel,
            out_shape=jax.ShapeDtypeStruct((M_pad, N_pad), out_dtype),
            grid=grid,
            in_specs=base_in_specs + [pl.BlockSpec((TM, TN), lambda i, j, k: (i, j))],
            out_specs=out_spec,
            scratch_shapes=scratch,
            compiler_params=cparams,
        )(a, b, bias_p, r)

    return pl.pallas_call(
        functools.partial(_conv_mm_kernel, relu=relu),
        out_shape=jax.ShapeDtypeStruct((M_pad, N_pad), out_dtype),
        grid=grid,
        in_specs=base_in_specs,
        out_specs=out_spec,
        scratch_shapes=scratch,
        compiler_params=cparams,
    )(a, b, bias_p)


def pool_fc_add_frame(x, fc_w, fc_b, frame_num, num_classes):
    """AdaptiveAvgPool3d((1,1,1)) + flatten + Linear + (+ frame_num), fused in one call."""
    N, D, H, W, C = x.shape
    L = D * H * W
    Npad = _round_up(num_classes, 128)
    w_p = jnp.pad(fc_w.astype(jnp.float32), ((0, 0), (0, Npad - num_classes)))
    b_p = jnp.pad(fc_b.astype(jnp.float32), ((0, 0), (0, Npad - num_classes)))
    f = jnp.reshape(jnp.asarray(frame_num, dtype=jnp.float32), (1, 1))
    out = pl.pallas_call(
        _pool_fc_kernel,
        out_shape=jax.ShapeDtypeStruct((N, Npad), jnp.float32),
        in_specs=[
            pl.BlockSpec(memory_space=pltpu.MemorySpace.VMEM),
            pl.BlockSpec(memory_space=pltpu.MemorySpace.VMEM),
            pl.BlockSpec(memory_space=pltpu.MemorySpace.VMEM),
            pl.BlockSpec(memory_space=pltpu.MemorySpace.SMEM),
        ],
        out_specs=pl.BlockSpec(memory_space=pltpu.MemorySpace.VMEM),
    )(x.reshape(N, L, C), w_p, b_p, f)
    return out[:, :num_classes]


# ------------------------- Conv3d via channels-last im2col (XLA glue) -------------------------

def im2col_ndhwc(x, ksize, stride, padding):
    """x: [N, D, H, W, C] -> cols [N*Do*Ho*Wo, kD*kH*kW*C], columns ordered (kd,kh,kw,c)."""
    N, D, H, W, C = x.shape
    kD, kH, kW = ksize
    sD, sH, sW = stride
    pD, pH, pW = padding
    xp = jnp.pad(x, ((0, 0), (pD, pD), (pH, pH), (pW, pW), (0, 0)))
    Do = (D + 2 * pD - kD) // sD + 1
    Ho = (H + 2 * pH - kH) // sH + 1
    Wo = (W + 2 * pW - kW) // sW + 1
    taps = []
    for kd in range(kD):
        for kh in range(kH):
            for kw in range(kW):
                taps.append(
                    xp[:, kd:kd + sD * Do:sD, kh:kh + sH * Ho:sH, kw:kw + sW * Wo:sW, :])
    if len(taps) == 1:
        p = taps[0][:, :, :, :, None, :]
    else:
        p = jnp.stack(taps, axis=4)                 # (N, Do, Ho, Wo, KT, C)
    cols = p.reshape(N * Do * Ho * Wo, kD * kH * kW * C)
    return cols, (Do, Ho, Wo)


def conv_bn(x, p, stride, padding, relu, residual=None):
    """Conv3d (no bias, NDHWC) + folded BatchNorm3d (eval) [+ residual] [+ ReLU]."""
    w = p['w']                                      # (cout, cin, kD, kH, kW)
    cout = w.shape[0]
    scale = p['gamma'] * jax.lax.rsqrt(p['var'] + 1e-5)
    w_f = w * scale[:, None, None, None, None]
    b_f = (p['beta'] - p['mean'] * scale)[None, :]
    # rows ordered (kd, kh, kw, cin) to match the im2col column order
    wmat = w_f.transpose(2, 3, 4, 1, 0).reshape(-1, cout)

    cols, (Do, Ho, Wo) = im2col_ndhwc(x, w.shape[2:], stride, padding)
    N = x.shape[0]
    M = N * Do * Ho * Wo

    r2d = None if residual is None else residual.reshape(M, cout)
    y = conv_matmul(cols, wmat, b_f, relu=relu, residual=r2d)
    return y[:M, :cout].reshape(N, Do, Ho, Wo, cout)


# ------------------------- mc3_18 parameters (deterministic init) -------------------------

def init_conv_bn(key, cin, cout, ksize):
    k1, k2, k3, k4, k5 = jax.random.split(key, 5)
    fan_in = cin * math.prod(ksize)
    return dict(
        w=jax.random.normal(k1, (cout, cin) + tuple(ksize), jnp.float32) * (2.0 / fan_in) ** 0.5,
        gamma=1.0 + 0.1 * jax.random.normal(k2, (cout,), jnp.float32),
        beta=0.1 * jax.random.normal(k3, (cout,), jnp.float32),
        mean=0.1 * jax.random.normal(k4, (cout,), jnp.float32),
        var=jax.random.uniform(k5, (cout,), jnp.float32, minval=0.5, maxval=1.5),
    )


def init_params(key, num_classes):
    keys = iter(jax.random.split(key, 64))
    params = {'stem': init_conv_bn(next(keys), 3, 64, (3, 7, 7))}
    # mc3_18: layer1 uses full 3x3x3 convs, layers 2-4 use 1x3x3 (no temporal) convs
    layer_cfg = [(64, 1, 'simple'), (128, 2, 'nt'), (256, 2, 'nt'), (512, 2, 'nt')]
    inplanes = 64
    layers = []
    for planes, stride, kind in layer_cfg:
        ksize = (3, 3, 3) if kind == 'simple' else (1, 3, 3)
        blocks = []
        for b in range(2):
            s = stride if b == 0 else 1
            blk = {
                'conv1': init_conv_bn(next(keys), inplanes, planes, ksize),
                'conv2': init_conv_bn(next(keys), planes, planes, ksize),
                'stride': s,
                'kind': kind,
            }
            if s != 1 or inplanes != planes:
                blk['downsample'] = init_conv_bn(next(keys), inplanes, planes, (1, 1, 1))
            blocks.append(blk)
            inplanes = planes
        layers.append(blocks)
    params['layers'] = layers
    params['fc_w'] = jax.random.normal(next(keys), (512, num_classes), jnp.float32) * 0.02
    params['fc_b'] = 0.01 * jax.random.normal(next(keys), (1, num_classes), jnp.float32)
    return params


# ------------------------- Forward pass -------------------------

def basic_block(x, blk):
    kind, s = blk['kind'], blk['stride']
    if kind == 'simple':
        stride1, pad = (s, s, s), (1, 1, 1)
    else:
        stride1, pad = (1, s, s), (0, 1, 1)

    out = conv_bn(x, blk['conv1'], stride1, pad, relu=True)

    if 'downsample' in blk:
        ds_stride = (s, s, s) if kind == 'simple' else (1, s, s)
        identity = conv_bn(x, blk['downsample'], ds_stride, (0, 0, 0), relu=False)
    else:
        identity = x

    # conv2 + BN + residual add + ReLU, fused inside the Pallas matmul kernel
    out = conv_bn(out, blk['conv2'], (1, 1, 1), pad, relu=True, residual=identity)
    return out


def cnn_i3d_forward(params, x_ncdhw, frame_num):
    # one relayout at entry: NCDHW (PyTorch) -> NDHWC (channels-last, lane-dense), bf16
    x = jnp.transpose(x_ncdhw, (0, 2, 3, 4, 1)).astype(jnp.bfloat16)
    # stem: Conv3d(3,64,(3,7,7),stride=(1,2,2),pad=(1,3,3)) + BN + ReLU
    x = conv_bn(x, params['stem'], (1, 2, 2), (1, 3, 3), relu=True)
    for blocks in params['layers']:
        for blk in blocks:
            x = basic_block(x, blk)
    # fused: AdaptiveAvgPool3d((1,1,1)) + flatten + fc + "+ frame_num"
    num_classes = params['fc_w'].shape[1]
    logits = pool_fc_add_frame(x, params['fc_w'], params['fc_b'], frame_num, num_classes)
    out = jnp.squeeze(logits)  # no size-1 dims here for N=2, num_classes=5
    return [out]


# ------------------------- Main -------------------------

if __name__ == "__main__":
    num_classes = 5
    key = jax.random.PRNGKey(0)
    k_param, k_x = jax.random.split(key)

    params = init_params(k_param, num_classes)

    # small video clip: batch=2, 3 channels, 8 frames, 16x16 spatial (NCDHW)
    x = jax.random.normal(k_x, (2, 3, 8, 16, 16), jnp.float32)
    frame_num = 8.0  # scalar added to the logits, as in the PyTorch forward

    out = cnn_i3d_forward(params, x, frame_num)
    result = jax.block_until_ready(out[0])
    assert result.shape == (2, num_classes)
    assert jnp.all(jnp.isfinite(result))
    print("KERNEL_OK")
</pallas_src>

<mosaic_0001>
module attributes {stable_mosaic.version = 11 : i64} {
  func.func @_conv_mm_kernel(%arg0: i32, %arg1: i32, %arg2: i32, %arg3: memref<512x512xbf16, #tpu.memory_space<vmem>>, %arg4: memref<512x128xbf16, #tpu.memory_space<vmem>>, %arg5: memref<1x128xf32, #tpu.memory_space<vmem>>, %arg6: memref<512x128xbf16, #tpu.memory_space<vmem>>, %arg7: memref<512x128xf32, #tpu.memory_space<vmem>>) attributes {dimension_semantics = [#tpu.dimension_semantics<parallel>, #tpu.dimension_semantics<parallel>, #tpu.dimension_semantics<arbitrary>], iteration_bounds = array<i64: 2, 1, 1>, scalar_prefetch = 0 : i64, scratch_operands = 1 : i64, tpu.core_type = #tpu.core_type<tc>, window_params = [{transform_indices = @transform_0, window_bounds = array<i64: 512, 512>}, {transform_indices = @transform_1, window_bounds = array<i64: 512, 128>}, {transform_indices = @transform_2, window_bounds = array<i64: 1, 128>}, {transform_indices = @transform_3, window_bounds = array<i64: 512, 128>}]} {
    %c0_i32 = arith.constant 0 : i32
    %0 = arith.cmpi eq, %arg2, %c0_i32 : i32
    %1 = arith.extui %0 : i1 to i32
    %c0_i32_0 = arith.constant 0 : i32
    %2 = arith.cmpi ne, %1, %c0_i32_0 : i32
    scf.if %2 {
      %cst_10 = arith.constant 0.000000e+00 : f32
      %12 = vector.broadcast %cst_10 : f32 to vector<512x128xf32>
      %c0_11 = arith.constant 0 : index
      %c0_12 = arith.constant 0 : index
      %13 = vector.load %arg7[%c0_11, %c0_12] : memref<512x128xf32, #tpu.memory_space<vmem>>, vector<512x128xf32>
      tpu.vector_store %arg7[%c0_11, %c0_12], %12 {strides = array<i32>} : memref<512x128xf32, #tpu.memory_space<vmem>>, vector<512x128xf32>,
    } else {
    }
    %c0 = arith.constant 0 : index
    %c0_1 = arith.constant 0 : index
    %3 = vector.load %arg7[%c0, %c0_1] : memref<512x128xf32, #tpu.memory_space<vmem>>, vector<512x128xf32>
    %c0_2 = arith.constant 0 : index
    %c0_3 = arith.constant 0 : index
    %4 = vector.load %arg3[%c0_2, %c0_3] : memref<512x512xbf16, #tpu.memory_space<vmem>>, vector<512x512xbf16>
    %c0_4 = arith.constant 0 : index
    %c0_5 = arith.constant 0 : index
    %5 = vector.load %arg4[%c0_4, %c0_5] : memref<512x128xbf16, #tpu.memory_space<vmem>>, vector<512x128xbf16>
    %cst = arith.constant dense<0.000000e+00> : vector<512x128xf32>
    %6 = tpu.matmul %4, %5, %cst {dimension_numbers = #tpu.dot_dimension_numbers<[1], [0], [0], [1], [0, 0, 1, 1], [], []>} : vector<512x512xbf16>, vector<512x128xbf16>, vector<512x128xf32> -> vector<512x128xf32>
    %7 = arith.addf %3, %6 : vector<512x128xf32>
    %c0_6 = arith.constant 0 : index
    %c0_7 = arith.constant 0 : index
    %8 = vector.load %arg7[%c0_6, %c0_7] : memref<512x128xf32, #tpu.memory_space<vmem>>, vector<512x128xf32>
    tpu.vector_store %arg7[%c0_6, %c0_7], %7 {strides = array<i32>} : memref<512x128xf32, #tpu.memory_space<vmem>>, vector<512x128xf32>,
    %c0_i32_8 = arith.constant 0 : i32
    %9 = arith.cmpi eq, %arg2, %c0_i32_8 : i32
    %10 = arith.extui %9 : i1 to i32
    %c0_i32_9 = arith.constant 0 : i32
    %11 = arith.cmpi ne, %10, %c0_i32_9 : i32
    scf.if %11 {
      %c0_10 = arith.constant 0 : index
      %c0_11 = arith.constant 0 : index
      %12 = vector.load %arg7[%c0_10, %c0_11] : memref<512x128xf32, #tpu.memory_space<vmem>>, vector<512x128xf32>
      %c0_12 = arith.constant 0 : index
      %c0_13 = arith.constant 0 : index
      %13 = vector.load %arg5[%c0_12, %c0_13] : memref<1x128xf32, #tpu.memory_space<vmem>>, vector<1x128xf32>
      %14 = vector.broadcast %13 : vector<1x128xf32> to vector<512x128xf32>
      %15 = arith.addf %12, %14 : vector<512x128xf32>
      %cst_14 = arith.constant 0.000000e+00 : f32
      %16 = vector.broadcast %cst_14 : f32 to vector<512x128xf32>
      %17 = arith.maximumf %15, %16 : vector<512x128xf32>
      %18 = arith.truncf %17 : vector<512x128xf32> to vector<512x128xbf16>
      %c0_15 = arith.constant 0 : index
      %c0_16 = arith.constant 0 : index
      %19 = vector.load %arg6[%c0_15, %c0_16] : memref<512x128xbf16, #tpu.memory_space<vmem>>, vector<512x128xbf16>
      tpu.vector_store %arg6[%c0_15, %c0_16], %18 {strides = array<i32>} : memref<512x128xbf16, #tpu.memory_space<vmem>>, vector<512x128xbf16>,
    } else {
    }
    return
  }
  func.func @transform_0(%arg0: i32, %arg1: i32, %arg2: i32) -> (i32, i32) {
    %c0_i32 = arith.constant 0 : i32
    return %arg0, %arg2 : i32, i32
  }
  func.func @transform_1(%arg0: i32, %arg1: i32, %arg2: i32) -> (i32, i32) {
    %c0_i32 = arith.constant 0 : i32
    return %arg2, %arg1 : i32, i32
  }
  func.func @transform_2(%arg0: i32, %arg1: i32, %arg2: i32) -> (i32, i32) {
    %c0_i32 = arith.constant 0 : i32
    %c0_i32_0 = arith.constant 0 : i32
    return %c0_i32, %arg1 : i32, i32
  }
  func.func @transform_3(%arg0: i32, %arg1: i32, %arg2: i32) -> (i32, i32) {
    %c0_i32 = arith.constant 0 : i32
    return %arg0, %arg1 : i32, i32
  }
}

</mosaic_0001>

<bundles_post_ra>
// kernel: tpu_custom_call.1
= control target key start
LH: loop header
LB: loop body
LE: loop exit
PB: predicated region body
PF: predicated region fallthrough
CT: control target
= control target key end

     0   :  { %s4468_s0 = inlined_call_operand.hbm [shape: bf16[1024,512], index: 0, kind: input, shape index: {}]   ;;  %s4469_s1 = inlined_call_operand.hbm [shape: bf16[512,128], index: 1, kind: input, shape index: {}]   ;;  %s4470_s2 = inlined_call_operand.vmem [shape: f32[1,128], index: 2, kind: input, shape index: {}]   ;;  %s4471_s3 = inlined_call_operand.hbm [shape: bf16[1024,128], index: 3, kind: output, shape index: {}]  }
   0x1   :  { %4472 = sst [smem:[#allocation12_spill]] %s4469_s1 }
   0x2   :  { %8 = vsyncpa [#allocation4], 0 }
   0x3   :  { %10 = vsyncpa [#allocation4 + $0x1], 0 }
   0x4   :  { %11 = vsyncpa [#allocation7], 0 }
   0x5   :  { %12 = vsyncpa [#allocation5], 0 }
   0x6   :  { %14 = vsyncpa [#allocation5 + $0x1], 0  ;;  %s3951_s12 = smov 0   ;;  %s3953_s13 = smov 0  }
   0x7   :  { %s3955_s14 = smov 0   ;;  %s3957_s15 = smov 0  }
   0x8   :  { %s3959_s16 = smov 0   ;;  %s3961_s17 = smov 0  }
   0x9 LB: > { %s2682_s18 = sadd.s32 4294967295, %s3922_s17   ;;  %s2683_s19 = sadd.s32 4294967294, %s3922_s17   ;;  %s3922_s17 = sphi %s3961_s17, %s20_s17   ;;  %s3918_s16 = sphi %s3959_s16, %s4485_s16   ;;  %s3914_s15 = sphi %s3957_s15, %s4484_s15   ;;  %s3910_s14 = sphi %s3955_s14, %s4483_s14   ;;  %s3906_s13 = sphi %s3953_s13, %s4482_s13   ;;  %s3902_s12 = sphi %s3951_s12, %s4481_s12  }
   0xa   : > { %p61_p0 = scmp.ne.s32.totalorder %s3906_s13, %s3902_s12  ;;  %p3985_p1 = scmp.eq.s32.totalorder %s2682_s18, 0 }
   0xb   : > { %p3989_p2 = scmp.eq.s32.totalorder %s2682_s18, 1  ;;  %p147_p3 = scmp.eq.s32.totalorder %s2683_s19, 1 }
   0xc   : > { %p3995_p4 = por %p3985_p1, %p61_p0  ;;  %p2684_p5 = scmp.ge.s32.totalorder %s3922_s17, 1 }
   0xd   : > { %p4000_p6 = por %p147_p3, %p61_p0  ;;  %p154_p7 = scmp.lt.s32.totalorder %s3922_s17, 3 }
   0xe   : > { %s4477_s1 = sld [smem:[#allocation12_spill]]  ;;  %s3924_s28 = smov [#allocation6]  }
   0xf   : > { %p4008_p8 = pnand %p2684_p5, %p154_p7  ;;  %s171_s29 = sshll.u32 %s3924_s28, 4  ;;  %s172_s29 = int_to_ptr.vmem [resolvable:$true] %s171_s29 }
  0x10   : > { %p2687_p11 = scmp.ge.s32.totalorder %s3922_s17, 2  ;;  %s3925_s30 = smov 64  }
  0x11   : > { %p3703_p9 = pneg %p4008_p8  ;;  %s3926_s4 = smov 4  }
  0x12   : > { %s39_s5 = sadd.s32 1, %s3918_s16  ;;  %s48_s6 = sadd.s32 1, %s3910_s14 }
  0x13   : > { %p3704_p10 = pnand %p3703_p9, %p3985_p1  ;;  %p41_p12 = scmp.ge.s32.totalorder %s39_s5, 2 }
  0x14   : > { %s169_s26 = sshll.u32 %s4477_s1, 4  ;;  %p55_p13 = scmp.ne.s32.totalorder %s3910_s14, %s3906_s13  ;;  %s170_s26 = int_to_ptr.hbm [resolvable:$true] %s169_s26 }
  0x15   : > { %3706 = dma.hbm_to_vmem [thread:$0]  (!%p3704_p10), %s170_s26, 4096, %s172_s29, [#allocation7], %s3925_s30, %s3925_s30, %s3926_s4  }
  0x16   : > { %p56_p0 = scmp.eq.s32.totalorder %s3922_s17, 0  ;;  %s4487_s5 = smov (%p41_p12, %s39_s5), 0 }
  0x17   : > { %p4030_p5 = por %p3989_p2, %p55_p13  ;;  %s43_s9 = ssub.s32 %s3918_s16, %s4487_s5 }
  0x18   : > { %p4024_p3 = por %p56_p0, %p55_p13  ;;  %p3716_p7 = scmp.lt.s32.totalorder %s3922_s17, 2 }
  0x19   : > { %p46_p9 = scmp.eq.s32.totalorder %s43_s9, 0  ;;  %s191_s10 = sand.u32 1, %s3910_s14  }
  0x1a   : > { %s2688_s11 = sshll.u32 %s191_s10, 10  ;;  %s3342_s19 = sshll.u32 %s3918_s16, 10 }
  0x1b   : > { %s4039_s18 = scalar_select %p46_p9, %s3910_s14, %s48_s6  }
  0x1c   : > { %s203_s26 = scalar_lea.hbm %s4468_s0, %s3342_s19  ;;  %s195_s28 = scalar_lea.vmem [#allocation3], %s2688_s11 }
  0x1d   : > { %s206_s29 = sshll.u32 %s195_s28, 4  ;;  %s204_s21 = sshll.u32 %s203_s26, 4  ;;  %s207_s29 = int_to_ptr.vmem [resolvable:$true] %s206_s29  ;;  %s205_s21 = int_to_ptr.hbm [resolvable:$true] %s204_s21 }
  0x1e   : > { %p3708_p2 = pnand %p3716_p7, %p4024_p3  ;;  %s192_s30 = scalar_lea.sflag [#allocation4], %s191_s10 }
  0x1f   : > { %s3927_s4 = smov 256   ;;  %s3928_s1 = smov 16  }
  0x20   : > { %3710 = dma.hbm_to_vmem [thread:$0]  (!%p3708_p2), %s205_s21, 16384, %s207_s29, %s192_s30, %s3927_s4, %s3927_s4, %s3928_s1  }
  0x21   : > { %218 = sbr.rel (%p4008_p8) target bundleno = 725 (0x2d5), region = 32  ;;  %s4050_s6 = sand.u32 (!%p4008_p8), 1, %s3906_s13  }
  0x22   : > { %s2693_s9 = sshll.u32 (!%p4008_p8), %s4050_s6, 10  ;;  %s221_s11 = scalar_lea.sflag (!%p4008_p8), [#allocation4], %s4050_s6 }
  0x23   : > { %s4054_s19 = scalar_lea.vmem (!%p4008_p8), [#allocation3], %s2693_s9 }
  0x26   : > { %3889 = dma.done.wait (%p3995_p4), %s221_s11, 16384  }
  0x27   : > { %3891 = vsyncadd (%p3995_p4), %s221_s11, 4294950912 }
  0x28   : > { %3893 = dma.done.wait (%p3985_p1), [#allocation7], 4096  }
  0x29   : > { %3895 = vsyncadd (%p3985_p1), [#allocation7], 4294963200  ;;  %v3478_v0 = vld [vmem:[#allocation6 + $0x38] sm:$0xff]  ;;  %v3477_v4 = vld [vmem:[#allocation6 + $0x30] sm:$0xff]  ;;  %s2695_s22 = sshll.u32 %s4050_s6, 8  ;;  %s3503_s24 = sshll.u32 %s3914_s15, 8 }
  0x2a   : > { %v3486_v1 = vld [vmem:[#allocation6 + $0x78] sm:$0xff]  ;;  %1419 = vmatpush.bf16.msra.mxu0 %v3478_v0  ;;  %v3485_v5 = vld [vmem:[#allocation6 + $0x70] sm:$0xff]  ;;  %v3476_v8 = vld [vmem:[#allocation6 + $0x28] sm:$0xff]  ;;  %s4152_s27 = scalar_lea.vmem [#allocation8], %s2695_s22  ;;  %s2563_s28 = scalar_lea.hbm %s4471_s3, %s3503_s24 }
  0x2b   : > { %v3494_v2 = vld [vmem:[#allocation6 + $0xb8] sm:$0xff]  ;;  %1588 = vmatpush.bf16.msra.mxu1 %v3486_v1  ;;  %v3493_v6 = vld [vmem:[#allocation6 + $0xb0] sm:$0xff]  ;;  %v3484_v9 = vld [vmem:[#allocation6 + $0x68] sm:$0xff]  ;;  %s2564_s29 = sshll.u32 %s4152_s27, 4  ;;  %s2566_s21 = sshll.u32 %s2563_s28, 4  ;;  %s2565_s29 = int_to_ptr.vmem [resolvable:$true] %s2564_s29  ;;  %s2567_s21 = int_to_ptr.hbm [resolvable:$true] %s2566_s21 }
  0x2c   : > { %v3502_v3 = vld [vmem:[#allocation6 + $0xf8] sm:$0xff]  ;;  %1757 = vmatpush.bf16.msra.mxu2 %v3494_v2  ;;  %v3501_v7 = vld [vmem:[#allocation6 + $0xf0] sm:$0xff]  ;;  %v3492_v10 = vld [vmem:[#allocation6 + $0xa8] sm:$0xff]  ;;  %s2551_s15 = scalar_lea.sflag [#allocation5], %s4050_s6  ;;  %s3850_s30 = sshra.s32 %s2567_s21, 4  ;;  %s3851_s30 = int_to_ptr.hbm [resolvable:$true] %s3850_s30 }
  0x2d   : > { %1926 = vmatpush.bf16.msra.mxu3 %v3502_v3  ;;  %v3500_v11 = vld [vmem:[#allocation6 + $0xe8] sm:$0xff]  ;;  %v3475_v12 = vld [vmem:[#allocation6 + $0x20] sm:$0xff]  ;;  %v3474_v16 = vld [vmem:[#allocation6 + $0x18] sm:$0xff]  ;;  %s3852_s4 = scalar_lea.hbm %s3851_s30, 256  ;;  %p3857_p10 = scmp.lt.s32.totalorder %s3851_s30, %s4471_s3 }
  0x2e   : > { %1420 = vmatpush.bf16.msra.mxu0 %v3477_v4  ;;  %v3483_v13 = vld [vmem:[#allocation6 + $0x60] sm:$0xff]  ;;  %v3482_v17 = vld [vmem:[#allocation6 + $0x58] sm:$0xff]  ;;  %v3473_v20 = vld [vmem:[#allocation6 + $0x10] sm:$0xff]  ;;  %p3853_p1 = scmp.ne.s32.totalorder %s3851_s30, %s3852_s4 }
  0x2f   : > { %1589 = vmatpush.bf16.msra.mxu1 %v3485_v5  ;;  %v3491_v14 = vld [vmem:[#allocation6 + $0xa0] sm:$0xff]  ;;  %v3490_v18 = vld [vmem:[#allocation6 + $0x98] sm:$0xff]  ;;  %v3481_v21 = vld [vmem:[#allocation6 + $0x50] sm:$0xff] }
  0x30   : > { %1758 = vmatpush.bf16.msra.mxu2 %v3493_v6  ;;  %v3499_v15 = vld [vmem:[#allocation6 + $0xe0] sm:$0xff]  ;;  %v3498_v19 = vld [vmem:[#allocation6 + $0xd8] sm:$0xff]  ;;  %v3489_v22 = vld [vmem:[#allocation6 + $0x90] sm:$0xff]  ;;  %p3854_p4 = pnand %p3853_p1, %p4030_p5 }
  0x31   : > { %1927 = vmatpush.bf16.msra.mxu3 %v3501_v7  ;;  %v3497_v23 = vld [vmem:[#allocation6 + $0xd0] sm:$0xff]  ;;  %v3472_v24 = vld [vmem:[#allocation6 + $0x8] sm:$0xff]  ;;  %v3471_v28 = vld [vmem:[#allocation6] sm:$0xff] }
  0x32   : > { %1421 = vmatpush.bf16.msra.mxu0 %v3476_v8  ;;  %v3480_v25 = vld [vmem:[#allocation6 + $0x48] sm:$0xff]  ;;  %v3479_v29 = vld [vmem:[#allocation6 + $0x40] sm:$0xff]  ;;  %v3345_v33 = vld [vmem:[%s4054_s19 + $0xc] sm:$0xf0]  ;;  %p3855_p8 = pneg %p3854_p4 }
  0x33   : > { %1590 = vmatpush.bf16.msra.mxu1 %v3484_v9  ;;  %v3488_v26 = vld [vmem:[#allocation6 + $0x88] sm:$0xff]  ;;  %v3487_v30 = vld [vmem:[#allocation6 + $0x80] sm:$0xff]  ;;  %v2700_v35 = vld [vmem:[%s4054_s19 + $0x10] sm:$0xf0] }
  0x34   : > { %1759 = vmatpush.bf16.msra.mxu2 %v3492_v10  ;;  %v3496_v27 = vld [vmem:[#allocation6 + $0xc8] sm:$0xff]  ;;  %v3495_v31 = vld [vmem:[#allocation6 + $0xc0] sm:$0xff]  ;;  %v3346_v37 = vld [vmem:[%s4054_s19 + $0x14] sm:$0xf0] }
  0x35   : > { %1928 = vmatpush.bf16.msra.mxu3 %v3500_v11  ;;  %v2698_v32 = vld [vmem:[%s4054_s19] sm:$0xf]  ;;  %v3343_v34 = vld [vmem:[%s4054_s19 + $0x4] sm:$0xf]  ;;  %v2706_v36 = vld [vmem:[%s4054_s19 + $0x8] sm:$0xf] }
  0x36   : > { %1422 = vmatpush.bf16.msra.mxu0 %v3475_v12  ;;  %v3344_v38 = vld [vmem:[%s4054_s19 + $0xc] sm:$0xf]  ;;  %v2708_v39 = vld [vmem:[%s4054_s19 + $0x18] sm:$0xf0]  ;;  %v2699_v40 = vor.u32 %v3345_v33, %v2698_v32  ;;  %v2703_v41 = vor.u32 %v3343_v34, %v2700_v35  ;;  %v2707_v42 = vor.u32 %v3346_v37, %v2706_v36  ;;  %v2714_v44 = vld [vmem:[%s4054_s19 + $0x20] sm:$0xf] }
  0x37   : > { %1591 = vmatpush.bf16.msra.mxu1 %v3483_v13  ;;  %v2711_v43 = vor.u32 %v3344_v38, %v2708_v39  ;;  %v3349_v45 = vld [vmem:[%s4054_s19 + $0x2c] sm:$0xf0]  ;;  %v3347_v46 = vld [vmem:[%s4054_s19 + $0x24] sm:$0xf]  ;;  %v2716_v47 = vld [vmem:[%s4054_s19 + $0x30] sm:$0xf0] }
  0x38   : > { %1760 = vmatpush.bf16.msra.mxu2 %v3491_v14  ;;  %v2722_v48 = vld [vmem:[%s4054_s19 + $0x28] sm:$0xf]  ;;  %v3350_v49 = vld [vmem:[%s4054_s19 + $0x34] sm:$0xf0]  ;;  %v3348_v50 = vld [vmem:[%s4054_s19 + $0x2c] sm:$0xf]  ;;  %v2715_v52 = vor.u32 %v3349_v45, %v2714_v44  ;;  %v2719_v53 = vor.u32 %v3347_v46, %v2716_v47 }
  0x39   : > { %1929 = vmatpush.bf16.msra.mxu3 %v3499_v15  ;;  %v2724_v51 = vld [vmem:[%s4054_s19 + $0x38] sm:$0xf0]  ;;  %v2723_v54 = vor.u32 %v3350_v49, %v2722_v48  ;;  %v2730_v56 = vld [vmem:[%s4054_s19 + $0x40] sm:$0xf]  ;;  %v3353_v57 = vld [vmem:[%s4054_s19 + $0x4c] sm:$0xf0] }
  0x3a   : > { %1423 = vmatpush.bf16.msra.mxu0 %v3474_v16  ;;  %v2727_v55 = vor.u32 %v3348_v50, %v2724_v51  ;;  %v3351_v58 = vld [vmem:[%s4054_s19 + $0x44] sm:$0xf]  ;;  %v2732_v59 = vld [vmem:[%s4054_s19 + $0x50] sm:$0xf0]  ;;  %v2738_v60 = vld [vmem:[%s4054_s19 + $0x48] sm:$0xf]  ;;  %v2731_v0 = vor.u32 %v3353_v57, %v2730_v56 }
  0x3b   : > { %1592 = vmatpush.bf16.msra.mxu1 %v3482_v17  ;;  %v3354_v61 = vld [vmem:[%s4054_s19 + $0x54] sm:$0xf0]  ;;  %v3352_v62 = vld [vmem:[%s4054_s19 + $0x4c] sm:$0xf]  ;;  %v2740_v63 = vld [vmem:[%s4054_s19 + $0x58] sm:$0xf0]  ;;  %v2735_v1 = vor.u32 %v3351_v58, %v2732_v59 }
  0x3c   : > { %1761 = vmatpush.bf16.msra.mxu2 %v3490_v18  ;;  %v2739_v2 = vor.u32 %v3354_v61, %v2738_v60  ;;  %v2743_v3 = vor.u32 %v3352_v62, %v2740_v63  ;;  %v2746_v4 = vld [vmem:[%s4054_s19 + $0x60] sm:$0xf]  ;;  %v3357_v5 = vld [vmem:[%s4054_s19 + $0x6c] sm:$0xf0]  ;;  %v3355_v6 = vld [vmem:[%s4054_s19 + $0x64] sm:$0xf] }
  0x3d   : > { %1930 = vmatpush.bf16.msra.mxu3 %v3498_v19  ;;  %v2748_v7 = vld [vmem:[%s4054_s19 + $0x70] sm:$0xf0]  ;;  %v2754_v8 = vld [vmem:[%s4054_s19 + $0x68] sm:$0xf]  ;;  %v3358_v9 = vld [vmem:[%s4054_s19 + $0x74] sm:$0xf0]  ;;  %v2747_v12 = vor.u32 %v3357_v5, %v2746_v4 }
  0x3e   : > { %1424 = vmatpush.bf16.msra.mxu0 %v3473_v20  ;;  %v3356_v10 = vld [vmem:[%s4054_s19 + $0x6c] sm:$0xf]  ;;  %v2756_v11 = vld [vmem:[%s4054_s19 + $0x78] sm:$0xf0]  ;;  %v2751_v13 = vor.u32 %v3355_v6, %v2748_v7  ;;  %v2755_v14 = vor.u32 %v3358_v9, %v2754_v8  ;;  %v2762_v16 = vld [vmem:[%s4054_s19 + $0x80] sm:$0xf] }
  0x3f   : > { %1593 = vmatpush.bf16.msra.mxu1 %v3481_v21  ;;  %v2759_v15 = vor.u32 %v3356_v10, %v2756_v11  ;;  %v3361_v17 = vld [vmem:[%s4054_s19 + $0x8c] sm:$0xf0]  ;;  %v3359_v18 = vld [vmem:[%s4054_s19 + $0x84] sm:$0xf]  ;;  %v2764_v19 = vld [vmem:[%s4054_s19 + $0x90] sm:$0xf0] }
  0x40   : > { %1762 = vmatpush.bf16.msra.mxu2 %v3489_v22  ;;  %v2770_v20 = vld [vmem:[%s4054_s19 + $0x88] sm:$0xf]  ;;  %v3362_v21 = vld [vmem:[%s4054_s19 + $0x94] sm:$0xf0]  ;;  %v3360_v22 = vld [vmem:[%s4054_s19 + $0x8c] sm:$0xf] }
  0x41   : > { %1931 = vmatpush.bf16.msra.mxu3 %v3497_v23  ;;  %v2772_v23 = vld [vmem:[%s4054_s19 + $0x98] sm:$0xf0]  ;;  %v2786_v32 = vld [vmem:[%s4054_s19 + $0xa8] sm:$0xf]  ;;  %v3366_v33 = vld [vmem:[%s4054_s19 + $0xb4] sm:$0xf0] }
  0x42   : > { %1425 = vmatpush.bf16.msra.mxu0 %v3472_v24  ;;  %v2763_v24 = vor.u32 %v3361_v17, %v2762_v16  ;;  %v3364_v34 = vld [vmem:[%s4054_s19 + $0xac] sm:$0xf]  ;;  %v2788_v35 = vld [vmem:[%s4054_s19 + $0xb8] sm:$0xf0]  ;;  %v2787_v38 = vor.u32 %v3366_v33, %v2786_v32  ;;  %v2802_v44 = vld [vmem:[%s4054_s19 + $0xc8] sm:$0xf] }
  0x43   : > { %1594 = vmatpush.bf16.msra.mxu1 %v3480_v25  ;;  %v2767_v25 = vor.u32 %v3359_v18, %v2764_v19  ;;  %v2791_v39 = vor.u32 %v3364_v34, %v2788_v35  ;;  %v3370_v45 = vld [vmem:[%s4054_s19 + $0xd4] sm:$0xf0]  ;;  %v3368_v46 = vld [vmem:[%s4054_s19 + $0xcc] sm:$0xf]  ;;  %v2804_v47 = vld [vmem:[%s4054_s19 + $0xd8] sm:$0xf0] }
  0x44   : > { %1763 = vmatpush.bf16.msra.mxu2 %v3488_v26  ;;  %v2771_v26 = vor.u32 %v3362_v21, %v2770_v20  ;;  %v2803_v50 = vor.u32 %v3370_v45, %v2802_v44  ;;  %v2807_v51 = vor.u32 %v3368_v46, %v2804_v47  ;;  %v2818_v56 = vld [vmem:[%s4054_s19 + $0xe8] sm:$0xf]  ;;  %v3374_v57 = vld [vmem:[%s4054_s19 + $0xf4] sm:$0xf0]  ;;  %v3372_v58 = vld [vmem:[%s4054_s19 + $0xec] sm:$0xf] }
  0x45   : > { %1932 = vmatpush.bf16.msra.mxu3 %v3496_v27  ;;  %v2775_v27 = vor.u32 %v3360_v22, %v2772_v23  ;;  %v2820_v59 = vld [vmem:[%s4054_s19 + $0xf8] sm:$0xf0]  ;;  %v2819_v62 = vor.u32 %v3374_v57, %v2818_v56  ;;  %v2834_v4 = vld [vmem:[%s4054_s19 + $0x108] sm:$0xf]  ;;  %v3378_v5 = vld [vmem:[%s4054_s19 + $0x114] sm:$0xf0] }
  0x46   : > { %1426 = vmatpush.bf16.msra.mxu0 %v3471_v28  ;;  %v2778_v28 = vld [vmem:[%s4054_s19 + $0xa0] sm:$0xf]  ;;  %v2823_v63 = vor.u32 %v3372_v58, %v2820_v59  ;;  %v3376_v6 = vld [vmem:[%s4054_s19 + $0x10c] sm:$0xf]  ;;  %v2836_v7 = vld [vmem:[%s4054_s19 + $0x118] sm:$0xf0] }
  0x47   : > { %1595 = vmatpush.bf16.msra.mxu1 %v3479_v29  ;;  %v3365_v29 = vld [vmem:[%s4054_s19 + $0xac] sm:$0xf0]  ;;  %v2842_v20 = vld [vmem:[%s4054_s19 + $0x120] sm:$0xf]  ;;  %v3379_v22 = vld [vmem:[%s4054_s19 + $0x124] sm:$0xf] }
  0x48   : > { %1764 = vmatpush.bf16.msra.mxu2 %v3487_v30  ;;  %v3363_v30 = vld [vmem:[%s4054_s19 + $0xa4] sm:$0xf]  ;;  %v2779_v36 = vor.u32 %v3365_v29, %v2778_v28  ;;  %v3381_v21 = vld [vmem:[%s4054_s19 + $0x12c] sm:$0xf0]  ;;  %v2844_v23 = vld [vmem:[%s4054_s19 + $0x130] sm:$0xf0] }
  0x49   : > { %1933 = vmatpush.bf16.msra.mxu3 %v3495_v31  ;;  %1427 = vmatmul.bf16.vlgmr.msra.gmra.mxu0 %v2699_v40  ;;  %v2780_v31 = vld [vmem:[%s4054_s19 + $0xb0] sm:$0xf0]  ;;  %v2794_v40 = vld [vmem:[%s4054_s19 + $0xc0] sm:$0xf]  ;;  %v2843_v33 = vor.u32 %v3381_v21, %v2842_v20  ;;  %v2847_v34 = vor.u32 %v3379_v22, %v2844_v23  ;;  %v2866_v56 = vld [vmem:[%s4054_s19 + $0x148] sm:$0xf] }
  0x4a   : > { %1596 = vmatmul.bf16.vlgmr.msra.gmra.mxu1 %v2703_v41  ;;  %v2783_v37 = vor.u32 %v3363_v30, %v2780_v31  ;;  %v3369_v41 = vld [vmem:[%s4054_s19 + $0xcc] sm:$0xf0]  ;;  %v4147_v29 = vld [vmem:[%s4470_s2] ss:$0 sm:$0xff]  ;;  %v3386_v57 = vld [vmem:[%s4054_s19 + $0x154] sm:$0xf0] }
  0x4b   : > { %1765 = vmatmul.bf16.vlgmr.msra.gmra.mxu2 %v2707_v42  ;;  %v3367_v42 = vld [vmem:[%s4054_s19 + $0xc4] sm:$0xf]  ;;  %v2795_v48 = vor.u32 %v3369_v41, %v2794_v40  ;;  %v3384_v58 = vld [vmem:[%s4054_s19 + $0x14c] sm:$0xf]  ;;  %v2868_v59 = vld [vmem:[%s4054_s19 + $0x158] sm:$0xf0] }
  0x4c   : > { %1934 = vmatmul.bf16.vlgmr.msra.gmra.mxu3 %v2711_v43  ;;  %v2796_v43 = vld [vmem:[%s4054_s19 + $0xd0] sm:$0xf0]  ;;  %v3389_v20 = vld [vmem:[%s4054_s19 + $0x16c] sm:$0xf0]  ;;  %v3387_v21 = vld [vmem:[%s4054_s19 + $0x164] sm:$0xf] }
  0x4d   : > { %v2799_v49 = vor.u32 %v3367_v42, %v2796_v43  ;;  %v2876_v22 = vld [vmem:[%s4054_s19 + $0x170] sm:$0xf0]  ;;  %v2882_v23 = vld [vmem:[%s4054_s19 + $0x168] sm:$0xf] }
  0x59   : > { %1432 = vmatmul.bf16.gmra.mxu0 %v2715_v52  ;;  %v2810_v52 = vld [vmem:[%s4054_s19 + $0xe0] sm:$0xf] }
  0x5a   : > { %1601 = vmatmul.bf16.gmra.mxu1 %v2719_v53  ;;  %v3373_v53 = vld [vmem:[%s4054_s19 + $0xec] sm:$0xf0] }
  0x5b   : > { %1770 = vmatmul.bf16.gmra.mxu2 %v2723_v54  ;;  %v3371_v54 = vld [vmem:[%s4054_s19 + $0xe4] sm:$0xf]  ;;  %v2811_v60 = vor.u32 %v3373_v53, %v2810_v52  ;;  %v2858_v52 = vld [vmem:[%s4054_s19 + $0x140] sm:$0xf]  ;;  %v3385_v53 = vld [vmem:[%s4054_s19 + $0x14c] sm:$0xf0] }
  0x5c   : > { %1939 = vmatmul.bf16.gmra.mxu3 %v2727_v55  ;;  %v2812_v55 = vld [vmem:[%s4054_s19 + $0xf0] sm:$0xf0] }
  0x5d   : > { %v2815_v61 = vor.u32 %v3371_v54, %v2812_v55  ;;  %v3383_v54 = vld [vmem:[%s4054_s19 + $0x144] sm:$0xf]  ;;  %v2860_v55 = vld [vmem:[%s4054_s19 + $0x150] sm:$0xf0] }
  0x69   : > { %1437 = vmatmul.bf16.gmra.mxu0 %v2731_v0  ;;  %v2826_v0 = vld [vmem:[%s4054_s19 + $0x100] sm:$0xf] }
  0x6a   : > { %1606 = vmatmul.bf16.gmra.mxu1 %v2735_v1  ;;  %v3377_v1 = vld [vmem:[%s4054_s19 + $0x10c] sm:$0xf0] }
  0x6b   : > { %1775 = vmatmul.bf16.gmra.mxu2 %v2739_v2  ;;  %v3375_v2 = vld [vmem:[%s4054_s19 + $0x104] sm:$0xf]  ;;  %v2827_v8 = vor.u32 %v3377_v1, %v2826_v0  ;;  %v2859_v0 = vor.u32 %v3385_v53, %v2858_v52  ;;  %v2863_v1 = vor.u32 %v3383_v54, %v2860_v55  ;;  %v3393_v52 = vld [vmem:[%s4054_s19 + $0x18c] sm:$0xf0]  ;;  %v2892_v54 = vld [vmem:[%s4054_s19 + $0x190] sm:$0xf0] }
  0x6c   : > { %1944 = vmatmul.bf16.gmra.mxu3 %v2743_v3  ;;  %v2828_v3 = vld [vmem:[%s4054_s19 + $0x110] sm:$0xf0]  ;;  %v3391_v53 = vld [vmem:[%s4054_s19 + $0x184] sm:$0xf]  ;;  %v2898_v55 = vld [vmem:[%s4054_s19 + $0x188] sm:$0xf] }
  0x6d   : > { %v2831_v9 = vor.u32 %v3375_v2, %v2828_v3 }
  0x79   : > { %1442 = vmatmul.bf16.gmra.mxu0 %v2747_v12  ;;  %v2835_v12 = vor.u32 %v3378_v5, %v2834_v4  ;;  %v2867_v5 = vor.u32 %v3386_v57, %v2866_v56  ;;  %v3394_v56 = vld [vmem:[%s4054_s19 + $0x194] sm:$0xf0]  ;;  %v3392_v57 = vld [vmem:[%s4054_s19 + $0x18c] sm:$0xf] }
  0x7a   : > { %1611 = vmatmul.bf16.gmra.mxu1 %v2751_v13  ;;  %v2839_v13 = vor.u32 %v3376_v6, %v2836_v7  ;;  %v2871_v6 = vor.u32 %v3384_v58, %v2868_v59  ;;  %v2900_v58 = vld [vmem:[%s4054_s19 + $0x198] sm:$0xf0] }
  0x7b   : > { %1780 = vmatmul.bf16.gmra.mxu2 %v2755_v14 }
  0x7c   : > { %1949 = vmatmul.bf16.gmra.mxu3 %v2759_v15 }
  0x89   : > { %1447 = vmatmul.bf16.gmra.mxu0 %v2763_v24  ;;  %v2850_v24 = vld [vmem:[%s4054_s19 + $0x128] sm:$0xf] }
  0x8a   : > { %1616 = vmatmul.bf16.gmra.mxu1 %v2767_v25  ;;  %v3382_v25 = vld [vmem:[%s4054_s19 + $0x134] sm:$0xf0] }
  0x8b   : > { %1785 = vmatmul.bf16.gmra.mxu2 %v2771_v26  ;;  %v3380_v26 = vld [vmem:[%s4054_s19 + $0x12c] sm:$0xf] }
  0x8c   : > { %1954 = vmatmul.bf16.gmra.mxu3 %v2775_v27  ;;  %v2852_v27 = vld [vmem:[%s4054_s19 + $0x138] sm:$0xf0] }
  0x99   : > { %1452 = vmatmul.bf16.gmra.mxu0 %v2779_v36 }
  0x9a   : > { %1621 = vmatmul.bf16.gmra.mxu1 %v2783_v37 }
  0x9b   : > { %1790 = vmatmul.bf16.gmra.mxu2 %v2787_v38  ;;  %v2851_v38 = vor.u32 %v3382_v25, %v2850_v24  ;;  %v3390_v24 = vld [vmem:[%s4054_s19 + $0x174] sm:$0xf0]  ;;  %v3388_v25 = vld [vmem:[%s4054_s19 + $0x16c] sm:$0xf] }
  0x9c   : > { %1959 = vmatmul.bf16.gmra.mxu3 %v2791_v39  ;;  %v2855_v39 = vor.u32 %v3380_v26, %v2852_v27  ;;  %v2884_v26 = vld [vmem:[%s4054_s19 + $0x178] sm:$0xf0] }
  0xa9   : > { %1457 = vmatmul.bf16.gmra.mxu0 %v2795_v48 }
  0xaa   : > { %1626 = vmatmul.bf16.gmra.mxu1 %v2799_v49 }
  0xab   : > { %1795 = vmatmul.bf16.gmra.mxu2 %v2803_v50 }
  0xac   : > { %1964 = vmatmul.bf16.gmra.mxu3 %v2807_v51 }
  0xb9   : > { %1462 = vmatmul.bf16.gmra.mxu0 %v2811_v60 }
  0xba   : > { %1631 = vmatmul.bf16.gmra.mxu1 %v2815_v61 }
  0xbb   : > { %1800 = vmatmul.bf16.gmra.mxu2 %v2819_v62 }
  0xbc   : > { %1969 = vmatmul.bf16.gmra.mxu3 %v2823_v63 }
  0xc6   : > { %v1428_v10 = vpop.f32.mrf.mxu0 }
  0xc7   : > { %v1597_v11 = vpop.f32.mrf.mxu1 }
  0xc8   : > { %v1598_v14 = vadd.f32 %v1597_v11, %v1428_v10 }
  0xc9   : > { %1467 = vmatmul.bf16.gmra.mxu0 %v2827_v8 }
  0xca   : > { %1636 = vmatmul.bf16.gmra.mxu1 %v2831_v9 }
  0xcb   : > { %1805 = vmatmul.bf16.gmra.mxu2 %v2835_v12 }
  0xcc   : > { %1974 = vmatmul.bf16.gmra.mxu3 %v2839_v13 }
  0xce   : > { %v1766_v15 = vpop.f32.mrf.mxu2  ;;  %v1430_v17 = vpop.f32.mrf.mxu0 }
  0xcf   : > { %v1935_v16 = vpop.f32.mrf.mxu3  ;;  %v1599_v18 = vpop.f32.mrf.mxu1  ;;  %v1767_v19 = vadd.f32 %v1766_v15, %v1598_v14 }
  0xd0   : > { %v1600_v30 = vadd.f32 %v1599_v18, %v1430_v17 }
  0xd1   : > { %v1936_v28 = vadd.f32 %v1935_v16, %v1767_v19  ;;  %v2874_v19 = vld [vmem:[%s4054_s19 + $0x160] sm:$0xf] }
  0xd3   : > { %v2294_v40 = vadd.f32 %v4147_v29, %v1936_v28 }
  0xd5   : > { %v2358_v43 = vmax.f32 %v2294_v40, 0.0 }
  0xd6   : > { %v1768_v31 = vpop.f32.mrf.mxu2  ;;  %v1433_v36 = vpop.f32.mrf.mxu0 }
  0xd7   : > { %v1937_v32 = vpop.f32.mrf.mxu3  ;;  %v1769_v35 = vadd.f32 %v1768_v31, %v1600_v30  ;;  %v1602_v37 = vpop.f32.mrf.mxu1 }
  0xd8   : > { %v1603_v45 = vadd.f32 %v1602_v37, %v1433_v36  ;;  %v2883_v37 = vor.u32 %v3390_v24, %v2882_v23  ;;  %v3398_v23 = vld [vmem:[%s4054_s19 + $0x1b4] sm:$0xf0]  ;;  %v3396_v24 = vld [vmem:[%s4054_s19 + $0x1ac] sm:$0xf] }
  0xd9   : > { %v1938_v41 = vadd.f32 %v1937_v32, %v1769_v35  ;;  %1472 = vmatmul.bf16.gmra.mxu0 %v2843_v33  ;;  %v2875_v32 = vor.u32 %v3389_v20, %v2874_v19  ;;  %v2879_v33 = vor.u32 %v3387_v21, %v2876_v22  ;;  %v3397_v19 = vld [vmem:[%s4054_s19 + $0x1ac] sm:$0xf0]  ;;  %v3395_v20 = vld [vmem:[%s4054_s19 + $0x1a4] sm:$0xf]  ;;  %v2908_v21 = vld [vmem:[%s4054_s19 + $0x1b0] sm:$0xf0] }
  0xda   : > { %1641 = vmatmul.bf16.gmra.mxu1 %v2847_v34  ;;  %v2914_v22 = vld [vmem:[%s4054_s19 + $0x1a8] sm:$0xf] }
  0xdb   : > { %v2295_v42 = vadd.f32 %v4147_v29, %v1938_v41  ;;  %1810 = vmatmul.bf16.gmra.mxu2 %v2851_v38  ;;  %v2887_v38 = vor.u32 %v3388_v25, %v2884_v26  ;;  %v2916_v25 = vld [vmem:[%s4054_s19 + $0x1b8] sm:$0xf0] }
  0xdc   : > { %1979 = vmatmul.bf16.gmra.mxu3 %v2855_v39 }
  0xdd   : > { %v2359_v44 = vmax.f32 %v2295_v42, 0.0 }
  0xde   : > { %v1771_v46 = vpop.f32.mrf.mxu2  ;;  %v1435_v49 = vpop.f32.mrf.mxu0 }
  0xdf   : > { %v1940_v47 = vpop.f32.mrf.mxu3  ;;  %v3507_v48 = vpack.c.bf16 %v2359_v44, %v2358_v43  ;;  %v1604_v50 = vpop.f32.mrf.mxu1  ;;  %v1772_v51 = vadd.f32 %v1771_v46, %v1603_v45 }
  0xe0   : > { %v1605_v61 = vadd.f32 %v1604_v50, %v1435_v49 }
  0xe1   : > { %3508 = vst [vmem:[%s4152_s27] sm:$0xff] %v3507_v48   ;;  %v1941_v60 = vadd.f32 %v1940_v47, %v1772_v51  ;;  %v2890_v51 = vld [vmem:[%s4054_s19 + $0x180] sm:$0xf] }
  0xe3   : > { %v2296_v7 = vadd.f32 %v4147_v29, %v1941_v60 }
  0xe5   : > { %v2360_v10 = vmax.f32 %v2296_v7, 0.0 }
  0xe6   : > { %v1773_v62 = vpop.f32.mrf.mxu2  ;;  %v1438_v3 = vpop.f32.mrf.mxu0 }
  0xe7   : > { %v1942_v63 = vpop.f32.mrf.mxu3  ;;  %v1774_v2 = vadd.f32 %v1773_v62, %v1605_v61  ;;  %v1607_v4 = vpop.f32.mrf.mxu1 }
  0xe8   : > { %v1608_v12 = vadd.f32 %v1607_v4, %v1438_v3  ;;  %v2899_v4 = vor.u32 %v3394_v56, %v2898_v55  ;;  %v3402_v55 = vld [vmem:[%s4054_s19 + $0x1d4] sm:$0xf0]  ;;  %v3400_v56 = vld [vmem:[%s4054_s19 + $0x1cc] sm:$0xf] }
  0xe9   : > { %v1943_v8 = vadd.f32 %v1942_v63, %v1774_v2  ;;  %1477 = vmatmul.bf16.gmra.mxu0 %v2859_v0  ;;  %v2891_v63 = vor.u32 %v3393_v52, %v2890_v51  ;;  %v2895_v0 = vor.u32 %v3391_v53, %v2892_v54  ;;  %v3401_v51 = vld [vmem:[%s4054_s19 + $0x1cc] sm:$0xf0]  ;;  %v3399_v52 = vld [vmem:[%s4054_s19 + $0x1c4] sm:$0xf]  ;;  %v2924_v53 = vld [vmem:[%s4054_s19 + $0x1d0] sm:$0xf0] }
  0xea   : > { %1646 = vmatmul.bf16.gmra.mxu1 %v2863_v1  ;;  %v2930_v54 = vld [vmem:[%s4054_s19 + $0x1c8] sm:$0xf] }
  0xeb   : > { %v2297_v9 = vadd.f32 %v4147_v29, %v1943_v8  ;;  %1815 = vmatmul.bf16.gmra.mxu2 %v2867_v5  ;;  %v2903_v5 = vor.u32 %v3392_v57, %v2900_v58  ;;  %v2932_v57 = vld [vmem:[%s4054_s19 + $0x1d8] sm:$0xf0] }
  0xec   : > { %1984 = vmatmul.bf16.gmra.mxu3 %v2871_v6 }
  0xed   : > { %v2361_v11 = vmax.f32 %v2297_v9, 0.0 }
  0xee   : > { %v1776_v13 = vpop.f32.mrf.mxu2  ;;  %v1440_v16 = vpop.f32.mrf.mxu0 }
  0xef   : > { %v1945_v14 = vpop.f32.mrf.mxu3  ;;  %v3512_v15 = vpack.c.bf16 %v2361_v11, %v2360_v10  ;;  %v1609_v17 = vpop.f32.mrf.mxu1  ;;  %v1777_v18 = vadd.f32 %v1776_v13, %v1608_v12 }
  0xf0   : > { %v1610_v28 = vadd.f32 %v1609_v17, %v1440_v16 }
  0xf1   : > { %3664 = vst [vmem:[%s4152_s27 + $0x8] sm:$0xff] %v3512_v15   ;;  %v1946_v27 = vadd.f32 %v1945_v14, %v1777_v18  ;;  %v2906_v18 = vld [vmem:[%s4054_s19 + $0x1a0] sm:$0xf] }
  0xf3   : > { %v2298_v39 = vadd.f32 %v4147_v29, %v1946_v27 }
  0xf5   : > { %v2362_v42 = vmax.f32 %v2298_v39, 0.0 }
  0xf6   : > { %v1778_v30 = vpop.f32.mrf.mxu2  ;;  %v1443_v35 = vpop.f32.mrf.mxu0 }
  0xf7   : > { %v1947_v31 = vpop.f32.mrf.mxu3  ;;  %v1779_v34 = vadd.f32 %v1778_v30, %v1610_v28  ;;  %v1612_v36 = vpop.f32.mrf.mxu1 }
  0xf8   : > { %v1613_v44 = vadd.f32 %v1612_v36, %v1443_v35  ;;  %v2915_v36 = vor.u32 %v3398_v23, %v2914_v22  ;;  %v3406_v22 = vld [vmem:[%s4054_s19 + $0x1f4] sm:$0xf0]  ;;  %v3404_v23 = vld [vmem:[%s4054_s19 + $0x1ec] sm:$0xf] }
  0xf9   : > { %v1948_v40 = vadd.f32 %v1947_v31, %v1779_v34  ;;  %1482 = vmatmul.bf16.gmra.mxu0 %v2875_v32  ;;  %v2907_v31 = vor.u32 %v3397_v19, %v2906_v18  ;;  %v2911_v32 = vor.u32 %v3395_v20, %v2908_v21  ;;  %v3405_v18 = vld [vmem:[%s4054_s19 + $0x1ec] sm:$0xf0]  ;;  %v3403_v19 = vld [vmem:[%s4054_s19 + $0x1e4] sm:$0xf]  ;;  %v2940_v20 = vld [vmem:[%s4054_s19 + $0x1f0] sm:$0xf0] }
  0xfa   : > { %1651 = vmatmul.bf16.gmra.mxu1 %v2879_v33  ;;  %v2946_v21 = vld [vmem:[%s4054_s19 + $0x1e8] sm:$0xf] }
  0xfb   : > { %v2299_v41 = vadd.f32 %v4147_v29, %v1948_v40  ;;  %1820 = vmatmul.bf16.gmra.mxu2 %v2883_v37  ;;  %v2919_v37 = vor.u32 %v3396_v24, %v2916_v25  ;;  %v2948_v24 = vld [vmem:[%s4054_s19 + $0x1f8] sm:$0xf0] }
  0xfc   : > { %1989 = vmatmul.bf16.gmra.mxu3 %v2887_v38 }
  0xfd   : > { %v2363_v43 = vmax.f32 %v2299_v41, 0.0 }
  0xfe   : > { %v1781_v45 = vpop.f32.mrf.mxu2  ;;  %v1445_v48 = vpop.f32.mrf.mxu0 }
  0xff   : > { %v1950_v46 = vpop.f32.mrf.mxu3  ;;  %v3517_v47 = vpack.c.bf16 %v2363_v43, %v2362_v42  ;;  %v1614_v49 = vpop.f32.mrf.mxu1  ;;  %v1782_v50 = vadd.f32 %v1781_v45, %v1613_v44 }
 0x100   : > { %v1615_v60 = vadd.f32 %v1614_v49, %v1445_v48 }
 0x101   : > { %3665 = vst [vmem:[%s4152_s27 + $0x10] sm:$0xff] %v3517_v47   ;;  %v1951_v59 = vadd.f32 %v1950_v46, %v1782_v50  ;;  %v2922_v50 = vld [vmem:[%s4054_s19 + $0x1c0] sm:$0xf] }
 0x103   : > { %v2300_v6 = vadd.f32 %v4147_v29, %v1951_v59 }
 0x105   : > { %v2364_v9 = vmax.f32 %v2300_v6, 0.0 }
 0x106   : > { %v1783_v61 = vpop.f32.mrf.mxu2  ;;  %v1448_v2 = vpop.f32.mrf.mxu0 }
 0x107   : > { %v1952_v62 = vpop.f32.mrf.mxu3  ;;  %v1784_v1 = vadd.f32 %v1783_v61, %v1615_v60  ;;  %v1617_v3 = vpop.f32.mrf.mxu1 }
 0x108   : > { %v1618_v11 = vadd.f32 %v1617_v3, %v1448_v2  ;;  %v2931_v3 = vor.u32 %v3402_v55, %v2930_v54  ;;  %v3410_v54 = vld [vmem:[%s4054_s19 + $0x214] sm:$0xf0]  ;;  %v3408_v55 = vld [vmem:[%s4054_s19 + $0x20c] sm:$0xf] }
 0x109   : > { %v1953_v7 = vadd.f32 %v1952_v62, %v1784_v1  ;;  %1487 = vmatmul.bf16.gmra.mxu0 %v2891_v63  ;;  %v2923_v62 = vor.u32 %v3401_v51, %v2922_v50  ;;  %v2927_v63 = vor.u32 %v3399_v52, %v2924_v53  ;;  %v3409_v50 = vld [vmem:[%s4054_s19 + $0x20c] sm:$0xf0]  ;;  %v3407_v51 = vld [vmem:[%s4054_s19 + $0x204] sm:$0xf]  ;;  %v2956_v52 = vld [vmem:[%s4054_s19 + $0x210] sm:$0xf0] }
 0x10a   : > { %1656 = vmatmul.bf16.gmra.mxu1 %v2895_v0  ;;  %v2962_v53 = vld [vmem:[%s4054_s19 + $0x208] sm:$0xf] }
 0x10b   : > { %v2301_v8 = vadd.f32 %v4147_v29, %v1953_v7  ;;  %1825 = vmatmul.bf16.gmra.mxu2 %v2899_v4  ;;  %v2935_v4 = vor.u32 %v3400_v56, %v2932_v57  ;;  %v2964_v56 = vld [vmem:[%s4054_s19 + $0x218] sm:$0xf0] }
 0x10c   : > { %1994 = vmatmul.bf16.gmra.mxu3 %v2903_v5 }
 0x10d   : > { %v2365_v10 = vmax.f32 %v2301_v8, 0.0 }
 0x10e   : > { %v1786_v12 = vpop.f32.mrf.mxu2  ;;  %v1450_v15 = vpop.f32.mrf.mxu0 }
 0x10f   : > { %v1955_v13 = vpop.f32.mrf.mxu3  ;;  %v3522_v14 = vpack.c.bf16 %v2365_v10, %v2364_v9  ;;  %v1619_v16 = vpop.f32.mrf.mxu1  ;;  %v1787_v17 = vadd.f32 %v1786_v12, %v1618_v11 }
 0x110   : > { %v1620_v27 = vadd.f32 %v1619_v16, %v1450_v15 }
 0x111   : > { %3666 = vst [vmem:[%s4152_s27 + $0x18] sm:$0xff] %v3522_v14   ;;  %v1956_v26 = vadd.f32 %v1955_v13, %v1787_v17  ;;  %v2938_v17 = vld [vmem:[%s4054_s19 + $0x1e0] sm:$0xf] }
 0x113   : > { %v2302_v38 = vadd.f32 %v4147_v29, %v1956_v26 }
 0x115   : > { %v2366_v41 = vmax.f32 %v2302_v38, 0.0 }
 0x116   : > { %v1788_v28 = vpop.f32.mrf.mxu2  ;;  %v1453_v34 = vpop.f32.mrf.mxu0 }
 0x117   : > { %v1957_v30 = vpop.f32.mrf.mxu3  ;;  %v1789_v33 = vadd.f32 %v1788_v28, %v1620_v27  ;;  %v1622_v35 = vpop.f32.mrf.mxu1 }
 0x118   : > { %v1623_v43 = vadd.f32 %v1622_v35, %v1453_v34  ;;  %v2947_v35 = vor.u32 %v3406_v22, %v2946_v21  ;;  %v3414_v21 = vld [vmem:[%s4054_s19 + $0x234] sm:$0xf0]  ;;  %v3412_v22 = vld [vmem:[%s4054_s19 + $0x22c] sm:$0xf] }
 0x119   : > { %v1958_v39 = vadd.f32 %v1957_v30, %v1789_v33  ;;  %1492 = vmatmul.bf16.gmra.mxu0 %v2907_v31  ;;  %v2939_v30 = vor.u32 %v3405_v18, %v2938_v17  ;;  %v2943_v31 = vor.u32 %v3403_v19, %v2940_v20  ;;  %v3413_v17 = vld [vmem:[%s4054_s19 + $0x22c] sm:$0xf0]  ;;  %v3411_v18 = vld [vmem:[%s4054_s19 + $0x224] sm:$0xf]  ;;  %v2972_v19 = vld [vmem:[%s4054_s19 + $0x230] sm:$0xf0] }
 0x11a   : > { %1661 = vmatmul.bf16.gmra.mxu1 %v2911_v32  ;;  %v2978_v20 = vld [vmem:[%s4054_s19 + $0x228] sm:$0xf] }
 0x11b   : > { %v2303_v40 = vadd.f32 %v4147_v29, %v1958_v39  ;;  %1830 = vmatmul.bf16.gmra.mxu2 %v2915_v36  ;;  %v2951_v36 = vor.u32 %v3404_v23, %v2948_v24  ;;  %v2980_v23 = vld [vmem:[%s4054_s19 + $0x238] sm:$0xf0] }
 0x11c   : > { %1999 = vmatmul.bf16.gmra.mxu3 %v2919_v37 }
 0x11d   : > { %v2367_v42 = vmax.f32 %v2303_v40, 0.0 }
 0x11e   : > { %v1791_v44 = vpop.f32.mrf.mxu2  ;;  %v1455_v47 = vpop.f32.mrf.mxu0 }
 0x11f   : > { %v1960_v45 = vpop.f32.mrf.mxu3  ;;  %v3527_v46 = vpack.c.bf16 %v2367_v42, %v2366_v41  ;;  %v1624_v48 = vpop.f32.mrf.mxu1  ;;  %v1792_v49 = vadd.f32 %v1791_v44, %v1623_v43 }
 0x120   : > { %v1625_v59 = vadd.f32 %v1624_v48, %v1455_v47 }
 0x121   : > { %3667 = vst [vmem:[%s4152_s27 + $0x20] sm:$0xff] %v3527_v46   ;;  %v1961_v58 = vadd.f32 %v1960_v45, %v1792_v49  ;;  %v2954_v49 = vld [vmem:[%s4054_s19 + $0x200] sm:$0xf] }
 0x123   : > { %v2304_v5 = vadd.f32 %v4147_v29, %v1961_v58 }
 0x125   : > { %v2368_v8 = vmax.f32 %v2304_v5, 0.0 }
 0x126   : > { %v1793_v60 = vpop.f32.mrf.mxu2  ;;  %v1458_v1 = vpop.f32.mrf.mxu0 }
 0x127   : > { %v1962_v61 = vpop.f32.mrf.mxu3  ;;  %v1794_v0 = vadd.f32 %v1793_v60, %v1625_v59  ;;  %v1627_v2 = vpop.f32.mrf.mxu1 }
 0x128   : > { %v1628_v10 = vadd.f32 %v1627_v2, %v1458_v1  ;;  %v2963_v2 = vor.u32 %v3410_v54, %v2962_v53  ;;  %v3418_v53 = vld [vmem:[%s4054_s19 + $0x254] sm:$0xf0]  ;;  %v3416_v54 = vld [vmem:[%s4054_s19 + $0x24c] sm:$0xf] }
 0x129   : > { %v1963_v6 = vadd.f32 %v1962_v61, %v1794_v0  ;;  %1497 = vmatmul.bf16.gmra.mxu0 %v2923_v62  ;;  %v2955_v61 = vor.u32 %v3409_v50, %v2954_v49  ;;  %v2959_v62 = vor.u32 %v3407_v51, %v2956_v52  ;;  %v3417_v49 = vld [vmem:[%s4054_s19 + $0x24c] sm:$0xf0]  ;;  %v3415_v50 = vld [vmem:[%s4054_s19 + $0x244] sm:$0xf]  ;;  %v2988_v51 = vld [vmem:[%s4054_s19 + $0x250] sm:$0xf0] }
 0x12a   : > { %1666 = vmatmul.bf16.gmra.mxu1 %v2927_v63  ;;  %v2994_v52 = vld [vmem:[%s4054_s19 + $0x248] sm:$0xf] }
 0x12b   : > { %v2305_v7 = vadd.f32 %v4147_v29, %v1963_v6  ;;  %1835 = vmatmul.bf16.gmra.mxu2 %v2931_v3  ;;  %v2967_v3 = vor.u32 %v3408_v55, %v2964_v56  ;;  %v2996_v55 = vld [vmem:[%s4054_s19 + $0x258] sm:$0xf0] }
 0x12c   : > { %2004 = vmatmul.bf16.gmra.mxu3 %v2935_v4 }
 0x12d   : > { %v2369_v9 = vmax.f32 %v2305_v7, 0.0 }
 0x12e   : > { %v1796_v11 = vpop.f32.mrf.mxu2  ;;  %v1460_v14 = vpop.f32.mrf.mxu0 }
 0x12f   : > { %v1965_v12 = vpop.f32.mrf.mxu3  ;;  %v3532_v13 = vpack.c.bf16 %v2369_v9, %v2368_v8  ;;  %v1629_v15 = vpop.f32.mrf.mxu1  ;;  %v1797_v16 = vadd.f32 %v1796_v11, %v1628_v10 }
 0x130   : > { %v1630_v26 = vadd.f32 %v1629_v15, %v1460_v14 }
 0x131   : > { %3668 = vst [vmem:[%s4152_s27 + $0x28] sm:$0xff] %v3532_v13   ;;  %v1966_v25 = vadd.f32 %v1965_v12, %v1797_v16  ;;  %v2970_v16 = vld [vmem:[%s4054_s19 + $0x220] sm:$0xf] }
 0x133   : > { %v2306_v37 = vadd.f32 %v4147_v29, %v1966_v25 }
 0x135   : > { %v2370_v40 = vmax.f32 %v2306_v37, 0.0 }
 0x136   : > { %v1798_v27 = vpop.f32.mrf.mxu2  ;;  %v1463_v33 = vpop.f32.mrf.mxu0 }
 0x137   : > { %v1967_v28 = vpop.f32.mrf.mxu3  ;;  %v1799_v32 = vadd.f32 %v1798_v27, %v1630_v26  ;;  %v1632_v34 = vpop.f32.mrf.mxu1 }
 0x138   : > { %v1633_v42 = vadd.f32 %v1632_v34, %v1463_v33  ;;  %v2979_v34 = vor.u32 %v3414_v21, %v2978_v20  ;;  %v3422_v20 = vld [vmem:[%s4054_s19 + $0x274] sm:$0xf0]  ;;  %v3420_v21 = vld [vmem:[%s4054_s19 + $0x26c] sm:$0xf] }
 0x139   : > { %v1968_v38 = vadd.f32 %v1967_v28, %v1799_v32  ;;  %1502 = vmatmul.bf16.gmra.mxu0 %v2939_v30  ;;  %v2971_v28 = vor.u32 %v3413_v17, %v2970_v16  ;;  %v2975_v30 = vor.u32 %v3411_v18, %v2972_v19  ;;  %v3421_v16 = vld [vmem:[%s4054_s19 + $0x26c] sm:$0xf0]  ;;  %v3419_v17 = vld [vmem:[%s4054_s19 + $0x264] sm:$0xf]  ;;  %v3004_v18 = vld [vmem:[%s4054_s19 + $0x270] sm:$0xf0] }
 0x13a   : > { %1671 = vmatmul.bf16.gmra.mxu1 %v2943_v31  ;;  %v3010_v19 = vld [vmem:[%s4054_s19 + $0x268] sm:$0xf] }
 0x13b   : > { %v2307_v39 = vadd.f32 %v4147_v29, %v1968_v38  ;;  %1840 = vmatmul.bf16.gmra.mxu2 %v2947_v35  ;;  %v2983_v35 = vor.u32 %v3412_v22, %v2980_v23  ;;  %v3012_v22 = vld [vmem:[%s4054_s19 + $0x278] sm:$0xf0] }
 0x13c   : > { %2009 = vmatmul.bf16.gmra.mxu3 %v2951_v36 }
 0x13d   : > { %v2371_v41 = vmax.f32 %v2307_v39, 0.0 }
 0x13e   : > { %v1801_v43 = vpop.f32.mrf.mxu2  ;;  %v1465_v46 = vpop.f32.mrf.mxu0 }
 0x13f   : > { %v1970_v44 = vpop.f32.mrf.mxu3  ;;  %v3537_v45 = vpack.c.bf16 %v2371_v41, %v2370_v40  ;;  %v1634_v47 = vpop.f32.mrf.mxu1  ;;  %v1802_v48 = vadd.f32 %v1801_v43, %v1633_v42 }
 0x140   : > { %v1635_v58 = vadd.f32 %v1634_v47, %v1465_v46 }
 0x141   : > { %3669 = vst [vmem:[%s4152_s27 + $0x30] sm:$0xff] %v3537_v45   ;;  %v1971_v57 = vadd.f32 %v1970_v44, %v1802_v48  ;;  %v2986_v48 = vld [vmem:[%s4054_s19 + $0x240] sm:$0xf] }
 0x143   : > { %v2308_v4 = vadd.f32 %v4147_v29, %v1971_v57 }
 0x145   : > { %v2372_v7 = vmax.f32 %v2308_v4, 0.0 }
 0x146   : > { %v1803_v59 = vpop.f32.mrf.mxu2  ;;  %v1468_v0 = vpop.f32.mrf.mxu0 }
 0x147   : > { %v1972_v60 = vpop.f32.mrf.mxu3  ;;  %v1804_v63 = vadd.f32 %v1803_v59, %v1635_v58  ;;  %v1637_v1 = vpop.f32.mrf.mxu1 }
 0x148   : > { %v1638_v9 = vadd.f32 %v1637_v1, %v1468_v0  ;;  %v2995_v1 = vor.u32 %v3418_v53, %v2994_v52  ;;  %v3426_v52 = vld [vmem:[%s4054_s19 + $0x294] sm:$0xf0]  ;;  %v3424_v53 = vld [vmem:[%s4054_s19 + $0x28c] sm:$0xf] }
 0x149   : > { %v1973_v5 = vadd.f32 %v1972_v60, %v1804_v63  ;;  %1507 = vmatmul.bf16.gmra.mxu0 %v2955_v61  ;;  %v2987_v60 = vor.u32 %v3417_v49, %v2986_v48  ;;  %v2991_v61 = vor.u32 %v3415_v50, %v2988_v51  ;;  %v3425_v48 = vld [vmem:[%s4054_s19 + $0x28c] sm:$0xf0]  ;;  %v3423_v49 = vld [vmem:[%s4054_s19 + $0x284] sm:$0xf]  ;;  %v3020_v50 = vld [vmem:[%s4054_s19 + $0x290] sm:$0xf0] }
 0x14a   : > { %1676 = vmatmul.bf16.gmra.mxu1 %v2959_v62  ;;  %v3026_v51 = vld [vmem:[%s4054_s19 + $0x288] sm:$0xf] }
 0x14b   : > { %v2309_v6 = vadd.f32 %v4147_v29, %v1973_v5  ;;  %1845 = vmatmul.bf16.gmra.mxu2 %v2963_v2  ;;  %v2999_v2 = vor.u32 %v3416_v54, %v2996_v55  ;;  %v3028_v54 = vld [vmem:[%s4054_s19 + $0x298] sm:$0xf0] }
 0x14c   : > { %2014 = vmatmul.bf16.gmra.mxu3 %v2967_v3 }
 0x14d   : > { %v2373_v8 = vmax.f32 %v2309_v6, 0.0 }
 0x14e   : > { %v1806_v10 = vpop.f32.mrf.mxu2  ;;  %v1470_v13 = vpop.f32.mrf.mxu0 }
 0x14f   : > { %v1975_v11 = vpop.f32.mrf.mxu3  ;;  %v3542_v12 = vpack.c.bf16 %v2373_v8, %v2372_v7  ;;  %v1639_v14 = vpop.f32.mrf.mxu1  ;;  %v1807_v15 = vadd.f32 %v1806_v10, %v1638_v9 }
 0x150   : > { %v1640_v25 = vadd.f32 %v1639_v14, %v1470_v13 }
 0x151   : > { %3670 = vst [vmem:[%s4152_s27 + $0x38] sm:$0xff] %v3542_v12   ;;  %v1976_v24 = vadd.f32 %v1975_v11, %v1807_v15  ;;  %v3002_v15 = vld [vmem:[%s4054_s19 + $0x260] sm:$0xf] }
 0x153   : > { %v2310_v36 = vadd.f32 %v4147_v29, %v1976_v24 }
 0x155   : > { %v2374_v39 = vmax.f32 %v2310_v36, 0.0 }
 0x156   : > { %v1808_v26 = vpop.f32.mrf.mxu2  ;;  %v1473_v32 = vpop.f32.mrf.mxu0 }
 0x157   : > { %v1977_v27 = vpop.f32.mrf.mxu3  ;;  %v1809_v31 = vadd.f32 %v1808_v26, %v1640_v25  ;;  %v1642_v33 = vpop.f32.mrf.mxu1 }
 0x158   : > { %v1643_v41 = vadd.f32 %v1642_v33, %v1473_v32  ;;  %v3011_v33 = vor.u32 %v3422_v20, %v3010_v19  ;;  %v3430_v19 = vld [vmem:[%s4054_s19 + $0x2b4] sm:$0xf0]  ;;  %v3428_v20 = vld [vmem:[%s4054_s19 + $0x2ac] sm:$0xf] }
 0x159   : > { %v1978_v37 = vadd.f32 %v1977_v27, %v1809_v31  ;;  %1512 = vmatmul.bf16.gmra.mxu0 %v2971_v28  ;;  %v3003_v27 = vor.u32 %v3421_v16, %v3002_v15  ;;  %v3007_v28 = vor.u32 %v3419_v17, %v3004_v18  ;;  %v3429_v15 = vld [vmem:[%s4054_s19 + $0x2ac] sm:$0xf0]  ;;  %v3427_v16 = vld [vmem:[%s4054_s19 + $0x2a4] sm:$0xf]  ;;  %v3036_v17 = vld [vmem:[%s4054_s19 + $0x2b0] sm:$0xf0] }
 0x15a   : > { %1681 = vmatmul.bf16.gmra.mxu1 %v2975_v30  ;;  %v3042_v18 = vld [vmem:[%s4054_s19 + $0x2a8] sm:$0xf] }
 0x15b   : > { %v2311_v38 = vadd.f32 %v4147_v29, %v1978_v37  ;;  %1850 = vmatmul.bf16.gmra.mxu2 %v2979_v34  ;;  %v3015_v34 = vor.u32 %v3420_v21, %v3012_v22  ;;  %v3044_v21 = vld [vmem:[%s4054_s19 + $0x2b8] sm:$0xf0] }
 0x15c   : > { %2019 = vmatmul.bf16.gmra.mxu3 %v2983_v35 }
 0x15d   : > { %v2375_v40 = vmax.f32 %v2311_v38, 0.0 }
 0x15e   : > { %v1811_v42 = vpop.f32.mrf.mxu2  ;;  %v1475_v45 = vpop.f32.mrf.mxu0 }
 0x15f   : > { %v1980_v43 = vpop.f32.mrf.mxu3  ;;  %v3547_v44 = vpack.c.bf16 %v2375_v40, %v2374_v39  ;;  %v1644_v46 = vpop.f32.mrf.mxu1  ;;  %v1812_v47 = vadd.f32 %v1811_v42, %v1643_v41 }
 0x160   : > { %v1645_v57 = vadd.f32 %v1644_v46, %v1475_v45 }
 0x161   : > { %3671 = vst [vmem:[%s4152_s27 + $0x40] sm:$0xff] %v3547_v44   ;;  %v1981_v56 = vadd.f32 %v1980_v43, %v1812_v47  ;;  %v3018_v47 = vld [vmem:[%s4054_s19 + $0x280] sm:$0xf] }
 0x163   : > { %v2312_v3 = vadd.f32 %v4147_v29, %v1981_v56 }
 0x165   : > { %v2376_v6 = vmax.f32 %v2312_v3, 0.0 }
 0x166   : > { %v1813_v58 = vpop.f32.mrf.mxu2  ;;  %v1478_v63 = vpop.f32.mrf.mxu0 }
 0x167   : > { %v1982_v59 = vpop.f32.mrf.mxu3  ;;  %v1814_v62 = vadd.f32 %v1813_v58, %v1645_v57  ;;  %v1647_v0 = vpop.f32.mrf.mxu1 }
 0x168   : > { %v1648_v8 = vadd.f32 %v1647_v0, %v1478_v63  ;;  %v3027_v0 = vor.u32 %v3426_v52, %v3026_v51  ;;  %v3434_v51 = vld [vmem:[%s4054_s19 + $0x2d4] sm:$0xf0]  ;;  %v3432_v52 = vld [vmem:[%s4054_s19 + $0x2cc] sm:$0xf] }
 0x169   : > { %v1983_v4 = vadd.f32 %v1982_v59, %v1814_v62  ;;  %1517 = vmatmul.bf16.gmra.mxu0 %v2987_v60  ;;  %v3019_v59 = vor.u32 %v3425_v48, %v3018_v47  ;;  %v3023_v60 = vor.u32 %v3423_v49, %v3020_v50  ;;  %v3433_v47 = vld [vmem:[%s4054_s19 + $0x2cc] sm:$0xf0]  ;;  %v3431_v48 = vld [vmem:[%s4054_s19 + $0x2c4] sm:$0xf]  ;;  %v3052_v49 = vld [vmem:[%s4054_s19 + $0x2d0] sm:$0xf0] }
 0x16a   : > { %1686 = vmatmul.bf16.gmra.mxu1 %v2991_v61  ;;  %v3058_v50 = vld [vmem:[%s4054_s19 + $0x2c8] sm:$0xf] }
 0x16b   : > { %v2313_v5 = vadd.f32 %v4147_v29, %v1983_v4  ;;  %1855 = vmatmul.bf16.gmra.mxu2 %v2995_v1  ;;  %v3031_v1 = vor.u32 %v3424_v53, %v3028_v54  ;;  %v3060_v53 = vld [vmem:[%s4054_s19 + $0x2d8] sm:$0xf0] }
 0x16c   : > { %2024 = vmatmul.bf16.gmra.mxu3 %v2999_v2 }
 0x16d   : > { %v2377_v7 = vmax.f32 %v2313_v5, 0.0 }
 0x16e   : > { %v1816_v9 = vpop.f32.mrf.mxu2  ;;  %v1480_v12 = vpop.f32.mrf.mxu0 }
 0x16f   : > { %v1985_v10 = vpop.f32.mrf.mxu3  ;;  %v3552_v11 = vpack.c.bf16 %v2377_v7, %v2376_v6  ;;  %v1649_v13 = vpop.f32.mrf.mxu1  ;;  %v1817_v14 = vadd.f32 %v1816_v9, %v1648_v8 }
 0x170   : > { %v1650_v24 = vadd.f32 %v1649_v13, %v1480_v12 }
 0x171   : > { %3672 = vst [vmem:[%s4152_s27 + $0x48] sm:$0xff] %v3552_v11   ;;  %v1986_v23 = vadd.f32 %v1985_v10, %v1817_v14  ;;  %v3034_v14 = vld [vmem:[%s4054_s19 + $0x2a0] sm:$0xf] }
 0x173   : > { %v2314_v35 = vadd.f32 %v4147_v29, %v1986_v23 }
 0x175   : > { %v2378_v38 = vmax.f32 %v2314_v35, 0.0 }
 0x176   : > { %v1818_v25 = vpop.f32.mrf.mxu2  ;;  %v1483_v31 = vpop.f32.mrf.mxu0 }
 0x177   : > { %v1987_v26 = vpop.f32.mrf.mxu3  ;;  %v1819_v30 = vadd.f32 %v1818_v25, %v1650_v24  ;;  %v1652_v32 = vpop.f32.mrf.mxu1 }
 0x178   : > { %v1653_v40 = vadd.f32 %v1652_v32, %v1483_v31  ;;  %v3043_v32 = vor.u32 %v3430_v19, %v3042_v18  ;;  %v3436_v18 = vld [vmem:[%s4054_s19 + $0x2ec] sm:$0xf]  ;;  %v3076_v19 = vld [vmem:[%s4054_s19 + $0x2f8] sm:$0xf0] }
 0x179   : > { %v1988_v36 = vadd.f32 %v1987_v26, %v1819_v30  ;;  %1522 = vmatmul.bf16.gmra.mxu0 %v3003_v27  ;;  %v3035_v26 = vor.u32 %v3429_v15, %v3034_v14  ;;  %v3039_v27 = vor.u32 %v3427_v16, %v3036_v17  ;;  %v3437_v14 = vld [vmem:[%s4054_s19 + $0x2ec] sm:$0xf0]  ;;  %v3068_v15 = vld [vmem:[%s4054_s19 + $0x2f0] sm:$0xf0]  ;;  %v3074_v16 = vld [vmem:[%s4054_s19 + $0x2e8] sm:$0xf] }
 0x17a   : > { %1691 = vmatmul.bf16.gmra.mxu1 %v3007_v28  ;;  %v3438_v17 = vld [vmem:[%s4054_s19 + $0x2f4] sm:$0xf0] }
 0x17b   : > { %v2315_v37 = vadd.f32 %v4147_v29, %v1988_v36  ;;  %1860 = vmatmul.bf16.gmra.mxu2 %v3011_v33  ;;  %v3047_v33 = vor.u32 %v3428_v20, %v3044_v21 }
 0x17c   : > { %2029 = vmatmul.bf16.gmra.mxu3 %v3015_v34 }
 0x17d   : > { %v2379_v39 = vmax.f32 %v2315_v37, 0.0 }
 0x17e   : > { %v1821_v41 = vpop.f32.mrf.mxu2  ;;  %v1485_v44 = vpop.f32.mrf.mxu0 }
 0x17f   : > { %v1990_v42 = vpop.f32.mrf.mxu3  ;;  %v3557_v43 = vpack.c.bf16 %v2379_v39, %v2378_v38  ;;  %v1654_v45 = vpop.f32.mrf.mxu1  ;;  %v1822_v46 = vadd.f32 %v1821_v41, %v1653_v40 }
 0x180   : > { %v1655_v56 = vadd.f32 %v1654_v45, %v1485_v44 }
 0x181   : > { %3673 = vst [vmem:[%s4152_s27 + $0x50] sm:$0xff] %v3557_v43   ;;  %v1991_v55 = vadd.f32 %v1990_v42, %v1822_v46  ;;  %v3050_v46 = vld [vmem:[%s4054_s19 + $0x2c0] sm:$0xf] }
 0x183   : > { %v2316_v2 = vadd.f32 %v4147_v29, %v1991_v55 }
 0x185   : > { %v2380_v5 = vmax.f32 %v2316_v2, 0.0 }
 0x186   : > { %v1823_v57 = vpop.f32.mrf.mxu2  ;;  %v1488_v62 = vpop.f32.mrf.mxu0 }
 0x187   : > { %v1992_v58 = vpop.f32.mrf.mxu3  ;;  %v1824_v61 = vadd.f32 %v1823_v57, %v1655_v56  ;;  %v1657_v63 = vpop.f32.mrf.mxu1 }
 0x188   : > { %v1658_v7 = vadd.f32 %v1657_v63, %v1488_v62  ;;  %v3059_v63 = vor.u32 %v3434_v51, %v3058_v50  ;;  %v3442_v50 = vld [vmem:[%s4054_s19 + $0x314] sm:$0xf0]  ;;  %v3440_v51 = vld [vmem:[%s4054_s19 + $0x30c] sm:$0xf] }
 0x189   : > { %v1993_v3 = vadd.f32 %v1992_v58, %v1824_v61  ;;  %1527 = vmatmul.bf16.gmra.mxu0 %v3019_v59  ;;  %v3051_v58 = vor.u32 %v3433_v47, %v3050_v46  ;;  %v3055_v59 = vor.u32 %v3431_v48, %v3052_v49  ;;  %v3441_v46 = vld [vmem:[%s4054_s19 + $0x30c] sm:$0xf0]  ;;  %v3439_v47 = vld [vmem:[%s4054_s19 + $0x304] sm:$0xf]  ;;  %v3084_v48 = vld [vmem:[%s4054_s19 + $0x310] sm:$0xf0] }
 0x18a   : > { %1696 = vmatmul.bf16.gmra.mxu1 %v3023_v60  ;;  %v3090_v49 = vld [vmem:[%s4054_s19 + $0x308] sm:$0xf] }
 0x18b   : > { %v2317_v4 = vadd.f32 %v4147_v29, %v1993_v3  ;;  %1865 = vmatmul.bf16.gmra.mxu2 %v3027_v0  ;;  %v3063_v0 = vor.u32 %v3432_v52, %v3060_v53  ;;  %v3092_v52 = vld [vmem:[%s4054_s19 + $0x318] sm:$0xf0] }
 0x18c   : > { %2034 = vmatmul.bf16.gmra.mxu3 %v3031_v1 }
 0x18d   : > { %v2381_v6 = vmax.f32 %v2317_v4, 0.0 }
 0x18e   : > { %v1826_v8 = vpop.f32.mrf.mxu2  ;;  %v1490_v11 = vpop.f32.mrf.mxu0 }
 0x18f   : > { %v1995_v9 = vpop.f32.mrf.mxu3  ;;  %v3562_v10 = vpack.c.bf16 %v2381_v6, %v2380_v5  ;;  %v1659_v12 = vpop.f32.mrf.mxu1  ;;  %v1827_v13 = vadd.f32 %v1826_v8, %v1658_v7 }
 0x190   : > { %v1660_v23 = vadd.f32 %v1659_v12, %v1490_v11 }
 0x191   : > { %3674 = vst [vmem:[%s4152_s27 + $0x58] sm:$0xff] %v3562_v10   ;;  %v1996_v22 = vadd.f32 %v1995_v9, %v1827_v13  ;;  %v3066_v13 = vld [vmem:[%s4054_s19 + $0x2e0] sm:$0xf] }
 0x193   : > { %v2318_v34 = vadd.f32 %v4147_v29, %v1996_v22 }
 0x195   : > { %v2382_v37 = vmax.f32 %v2318_v34, 0.0 }
 0x196   : > { %v1828_v24 = vpop.f32.mrf.mxu2  ;;  %v1493_v30 = vpop.f32.mrf.mxu0 }
 0x197   : > { %v1997_v25 = vpop.f32.mrf.mxu3  ;;  %v1829_v28 = vadd.f32 %v1828_v24, %v1660_v23  ;;  %v1662_v31 = vpop.f32.mrf.mxu1  ;;  %v3067_v24 = vor.u32 %v3437_v14, %v3066_v13  ;;  %v3445_v13 = vld [vmem:[%s4054_s19 + $0x32c] sm:$0xf0]  ;;  %v3443_v14 = vld [vmem:[%s4054_s19 + $0x324] sm:$0xf] }
 0x198   : > { %v1663_v39 = vadd.f32 %v1662_v31, %v1493_v30  ;;  %v3075_v30 = vor.u32 %v3438_v17, %v3074_v16  ;;  %v3079_v31 = vor.u32 %v3436_v18, %v3076_v19  ;;  %v3446_v16 = vld [vmem:[%s4054_s19 + $0x334] sm:$0xf0]  ;;  %v3444_v17 = vld [vmem:[%s4054_s19 + $0x32c] sm:$0xf]  ;;  %v3108_v18 = vld [vmem:[%s4054_s19 + $0x338] sm:$0xf0] }
 0x199   : > { %v1998_v35 = vadd.f32 %v1997_v25, %v1829_v28  ;;  %1532 = vmatmul.bf16.gmra.mxu0 %v3035_v26 }
 0x19a   : > { %1701 = vmatmul.bf16.gmra.mxu1 %v3039_v27 }
 0x19b   : > { %v2319_v36 = vadd.f32 %v4147_v29, %v1998_v35  ;;  %1870 = vmatmul.bf16.gmra.mxu2 %v3043_v32  ;;  %v4309_v32 = vld [vmem:[%s4470_s2] ss:$0 sm:$0xff] }
 0x19c   : > { %2039 = vmatmul.bf16.gmra.mxu3 %v3047_v33 }
 0x19d   : > { %v2383_v38 = vmax.f32 %v2319_v36, 0.0 }
 0x19e   : > { %v1831_v40 = vpop.f32.mrf.mxu2  ;;  %v1495_v43 = vpop.f32.mrf.mxu0 }
 0x19f   : > { %v2000_v41 = vpop.f32.mrf.mxu3  ;;  %v3567_v42 = vpack.c.bf16 %v2383_v38, %v2382_v37  ;;  %v1664_v44 = vpop.f32.mrf.mxu1  ;;  %v1832_v45 = vadd.f32 %v1831_v40, %v1663_v39 }
 0x1a0   : > { %v1665_v55 = vadd.f32 %v1664_v44, %v1495_v43 }
 0x1a1   : > { %3675 = vst [vmem:[%s4152_s27 + $0x60] sm:$0xff] %v3567_v42   ;;  %v2001_v54 = vadd.f32 %v2000_v41, %v1832_v45  ;;  %v3082_v45 = vld [vmem:[%s4054_s19 + $0x300] sm:$0xf] }
 0x1a3   : > { %v2320_v1 = vadd.f32 %v4147_v29, %v2001_v54 }
 0x1a5   : > { %v2384_v4 = vmax.f32 %v2320_v1, 0.0 }
 0x1a6   : > { %v1833_v56 = vpop.f32.mrf.mxu2  ;;  %v1498_v61 = vpop.f32.mrf.mxu0 }
 0x1a7   : > { %v2002_v57 = vpop.f32.mrf.mxu3  ;;  %v1834_v60 = vadd.f32 %v1833_v56, %v1665_v55  ;;  %v1667_v62 = vpop.f32.mrf.mxu1 }
 0x1a8   : > { %v1668_v6 = vadd.f32 %v1667_v62, %v1498_v61  ;;  %v3091_v62 = vor.u32 %v3442_v50, %v3090_v49  ;;  %v3450_v49 = vld [vmem:[%s4054_s19 + $0x354] sm:$0xf0]  ;;  %v3448_v50 = vld [vmem:[%s4054_s19 + $0x34c] sm:$0xf] }
 0x1a9   : > { %v2003_v2 = vadd.f32 %v2002_v57, %v1834_v60  ;;  %1537 = vmatmul.bf16.gmra.mxu0 %v3051_v58  ;;  %v3083_v57 = vor.u32 %v3441_v46, %v3082_v45  ;;  %v3087_v58 = vor.u32 %v3439_v47, %v3084_v48  ;;  %v3449_v45 = vld [vmem:[%s4054_s19 + $0x34c] sm:$0xf0]  ;;  %v3447_v46 = vld [vmem:[%s4054_s19 + $0x344] sm:$0xf]  ;;  %v3116_v47 = vld [vmem:[%s4054_s19 + $0x350] sm:$0xf0] }
 0x1aa   : > { %1706 = vmatmul.bf16.gmra.mxu1 %v3055_v59  ;;  %v3122_v48 = vld [vmem:[%s4054_s19 + $0x348] sm:$0xf] }
 0x1ab   : > { %v2321_v3 = vadd.f32 %v4147_v29, %v2003_v2  ;;  %1875 = vmatmul.bf16.gmra.mxu2 %v3059_v63  ;;  %v3435_v29 = vld [vmem:[%s4054_s19 + $0x2e4] sm:$0xf]  ;;  %v3095_v63 = vor.u32 %v3440_v51, %v3092_v52  ;;  %v3124_v51 = vld [vmem:[%s4054_s19 + $0x358] sm:$0xf0] }
 0x1ac   : > { %2044 = vmatmul.bf16.gmra.mxu3 %v3063_v0  ;;  %v3071_v25 = vor.u32 %v3435_v29, %v3068_v15  ;;  %v3100_v29 = vld [vmem:[%s4054_s19 + $0x330] sm:$0xf0]  ;;  %v3106_v15 = vld [vmem:[%s4054_s19 + $0x328] sm:$0xf] }
 0x1ad   : > { %v2385_v5 = vmax.f32 %v2321_v3, 0.0 }
 0x1ae   : > { %v1836_v7 = vpop.f32.mrf.mxu2  ;;  %v1500_v10 = vpop.f32.mrf.mxu0 }
 0x1af   : > { %v2005_v8 = vpop.f32.mrf.mxu3  ;;  %v3572_v9 = vpack.c.bf16 %v2385_v5, %v2384_v4  ;;  %v1669_v11 = vpop.f32.mrf.mxu1  ;;  %v1837_v12 = vadd.f32 %v1836_v7, %v1668_v6 }
 0x1b0   : > { %v1670_v21 = vadd.f32 %v1669_v11, %v1500_v10 }
 0x1b1   : > { %3676 = vst [vmem:[%s4152_s27 + $0x68] sm:$0xff] %v3572_v9   ;;  %v2006_v20 = vadd.f32 %v2005_v8, %v1837_v12  ;;  %v3098_v12 = vld [vmem:[%s4054_s19 + $0x320] sm:$0xf] }
 0x1b3   : > { %v2322_v33 = vadd.f32 %v4309_v32, %v2006_v20 }
 0x1b5   : > { %v2386_v36 = vmax.f32 %v2322_v33, 0.0 }
 0x1b6   : > { %v1838_v22 = vpop.f32.mrf.mxu2  ;;  %v1503_v27 = vpop.f32.mrf.mxu0 }
 0x1b7   : > { %v2007_v23 = vpop.f32.mrf.mxu3  ;;  %v1839_v26 = vadd.f32 %v1838_v22, %v1670_v21  ;;  %v1672_v28 = vpop.f32.mrf.mxu1 }
 0x1b8   : > { %v1673_v38 = vadd.f32 %v1672_v28, %v1503_v27  ;;  %v3107_v28 = vor.u32 %v3446_v16, %v3106_v15  ;;  %v3454_v15 = vld [vmem:[%s4054_s19 + $0x374] sm:$0xf0]  ;;  %v3452_v16 = vld [vmem:[%s4054_s19 + $0x36c] sm:$0xf] }
 0x1b9   : > { %v2008_v34 = vadd.f32 %v2007_v23, %v1839_v26  ;;  %1542 = vmatmul.bf16.gmra.mxu0 %v3067_v24  ;;  %v3099_v23 = vor.u32 %v3445_v13, %v3098_v12  ;;  %v3103_v24 = vor.u32 %v3443_v14, %v3100_v29  ;;  %v3453_v12 = vld [vmem:[%s4054_s19 + $0x36c] sm:$0xf0]  ;;  %v3451_v13 = vld [vmem:[%s4054_s19 + $0x364] sm:$0xf]  ;;  %v3132_v14 = vld [vmem:[%s4054_s19 + $0x370] sm:$0xf0] }
 0x1ba   : > { %1711 = vmatmul.bf16.gmra.mxu1 %v3071_v25  ;;  %v3138_v29 = vld [vmem:[%s4054_s19 + $0x368] sm:$0xf] }
 0x1bb   : > { %v2323_v35 = vadd.f32 %v4309_v32, %v2008_v34  ;;  %1880 = vmatmul.bf16.gmra.mxu2 %v3075_v30  ;;  %v3111_v30 = vor.u32 %v3444_v17, %v3108_v18  ;;  %v3140_v17 = vld [vmem:[%s4054_s19 + $0x378] sm:$0xf0] }
 0x1bc   : > { %2049 = vmatmul.bf16.gmra.mxu3 %v3079_v31 }
 0x1bd   : > { %v2387_v37 = vmax.f32 %v2323_v35, 0.0 }
 0x1be   : > { %v1841_v39 = vpop.f32.mrf.mxu2  ;;  %v1505_v42 = vpop.f32.mrf.mxu0 }
 0x1bf   : > { %v2010_v40 = vpop.f32.mrf.mxu3  ;;  %v3577_v41 = vpack.c.bf16 %v2387_v37, %v2386_v36  ;;  %v1674_v43 = vpop.f32.mrf.mxu1  ;;  %v1842_v44 = vadd.f32 %v1841_v39, %v1673_v38 }
 0x1c0   : > { %v1675_v54 = vadd.f32 %v1674_v43, %v1505_v42 }
 0x1c1   : > { %3677 = vst [vmem:[%s4152_s27 + $0x70] sm:$0xff] %v3577_v41   ;;  %v2011_v53 = vadd.f32 %v2010_v40, %v1842_v44  ;;  %v3114_v44 = vld [vmem:[%s4054_s19 + $0x340] sm:$0xf] }
 0x1c3   : > { %v2324_v0 = vadd.f32 %v4309_v32, %v2011_v53 }
 0x1c5   : > { %v2388_v3 = vmax.f32 %v2324_v0, 0.0 }
 0x1c6   : > { %v1843_v55 = vpop.f32.mrf.mxu2  ;;  %v1508_v60 = vpop.f32.mrf.mxu0 }
 0x1c7   : > { %v2012_v56 = vpop.f32.mrf.mxu3  ;;  %v1844_v59 = vadd.f32 %v1843_v55, %v1675_v54  ;;  %v1677_v61 = vpop.f32.mrf.mxu1 }
 0x1c8   : > { %v1678_v5 = vadd.f32 %v1677_v61, %v1508_v60  ;;  %v3123_v61 = vor.u32 %v3450_v49, %v3122_v48  ;;  %v3458_v48 = vld [vmem:[%s4054_s19 + $0x394] sm:$0xf0]  ;;  %v3456_v49 = vld [vmem:[%s4054_s19 + $0x38c] sm:$0xf] }
 0x1c9   : > { %v2013_v1 = vadd.f32 %v2012_v56, %v1844_v59  ;;  %1547 = vmatmul.bf16.gmra.mxu0 %v3083_v57  ;;  %v3115_v56 = vor.u32 %v3449_v45, %v3114_v44  ;;  %v3119_v57 = vor.u32 %v3447_v46, %v3116_v47  ;;  %v3457_v44 = vld [vmem:[%s4054_s19 + $0x38c] sm:$0xf0]  ;;  %v3455_v45 = vld [vmem:[%s4054_s19 + $0x384] sm:$0xf]  ;;  %v3148_v46 = vld [vmem:[%s4054_s19 + $0x390] sm:$0xf0] }
 0x1ca   : > { %1716 = vmatmul.bf16.gmra.mxu1 %v3087_v58  ;;  %v3154_v47 = vld [vmem:[%s4054_s19 + $0x388] sm:$0xf] }
 0x1cb   : > { %v2325_v2 = vadd.f32 %v4309_v32, %v2013_v1  ;;  %1885 = vmatmul.bf16.gmra.mxu2 %v3091_v62  ;;  %v3127_v62 = vor.u32 %v3448_v50, %v3124_v51  ;;  %v3156_v50 = vld [vmem:[%s4054_s19 + $0x398] sm:$0xf0] }
 0x1cc   : > { %2054 = vmatmul.bf16.gmra.mxu3 %v3095_v63 }
 0x1cd   : > { %v2389_v4 = vmax.f32 %v2325_v2, 0.0 }
 0x1ce   : > { %v1846_v6 = vpop.f32.mrf.mxu2  ;;  %v1510_v9 = vpop.f32.mrf.mxu0 }
 0x1cf   : > { %v2015_v7 = vpop.f32.mrf.mxu3  ;;  %v3582_v8 = vpack.c.bf16 %v2389_v4, %v2388_v3  ;;  %v1679_v10 = vpop.f32.mrf.mxu1  ;;  %v1847_v11 = vadd.f32 %v1846_v6, %v1678_v5 }
 0x1d0   : > { %v1680_v20 = vadd.f32 %v1679_v10, %v1510_v9 }
 0x1d1   : > { %3678 = vst [vmem:[%s4152_s27 + $0x78] sm:$0xff] %v3582_v8   ;;  %v2016_v19 = vadd.f32 %v2015_v7, %v1847_v11  ;;  %v3130_v11 = vld [vmem:[%s4054_s19 + $0x360] sm:$0xf] }
 0x1d3   : > { %v2326_v31 = vadd.f32 %v4309_v32, %v2016_v19 }
 0x1d5   : > { %v2390_v35 = vmax.f32 %v2326_v31, 0.0 }
 0x1d6   : > { %v1848_v21 = vpop.f32.mrf.mxu2  ;;  %v1513_v26 = vpop.f32.mrf.mxu0 }
 0x1d7   : > { %v2017_v22 = vpop.f32.mrf.mxu3  ;;  %v1849_v25 = vadd.f32 %v1848_v21, %v1680_v20  ;;  %v1682_v27 = vpop.f32.mrf.mxu1 }
 0x1d8   : > { %v1683_v37 = vadd.f32 %v1682_v27, %v1513_v26  ;;  %v3139_v27 = vor.u32 %v3454_v15, %v3138_v29  ;;  %v3462_v29 = vld [vmem:[%s4054_s19 + $0x3b4] sm:$0xf0]  ;;  %v3460_v15 = vld [vmem:[%s4054_s19 + $0x3ac] sm:$0xf] }
 0x1d9   : > { %v2018_v33 = vadd.f32 %v2017_v22, %v1849_v25  ;;  %1552 = vmatmul.bf16.gmra.mxu0 %v3099_v23  ;;  %v3131_v22 = vor.u32 %v3453_v12, %v3130_v11  ;;  %v3135_v23 = vor.u32 %v3451_v13, %v3132_v14  ;;  %v3461_v11 = vld [vmem:[%s4054_s19 + $0x3ac] sm:$0xf0]  ;;  %v3459_v12 = vld [vmem:[%s4054_s19 + $0x3a4] sm:$0xf]  ;;  %v3164_v13 = vld [vmem:[%s4054_s19 + $0x3b0] sm:$0xf0] }
 0x1da   : > { %1721 = vmatmul.bf16.gmra.mxu1 %v3103_v24  ;;  %v3170_v14 = vld [vmem:[%s4054_s19 + $0x3a8] sm:$0xf] }
 0x1db   : > { %v2327_v34 = vadd.f32 %v4309_v32, %v2018_v33  ;;  %1890 = vmatmul.bf16.gmra.mxu2 %v3107_v28  ;;  %v3143_v28 = vor.u32 %v3452_v16, %v3140_v17  ;;  %v3172_v16 = vld [vmem:[%s4054_s19 + $0x3b8] sm:$0xf0] }
 0x1dc   : > { %2059 = vmatmul.bf16.gmra.mxu3 %v3111_v30 }
 0x1dd   : > { %v2391_v36 = vmax.f32 %v2327_v34, 0.0 }
 0x1de   : > { %v1851_v38 = vpop.f32.mrf.mxu2  ;;  %v1515_v41 = vpop.f32.mrf.mxu0 }
 0x1df   : > { %v2020_v39 = vpop.f32.mrf.mxu3  ;;  %v3587_v40 = vpack.c.bf16 %v2391_v36, %v2390_v35  ;;  %v1684_v42 = vpop.f32.mrf.mxu1  ;;  %v1852_v43 = vadd.f32 %v1851_v38, %v1683_v37 }
 0x1e0   : > { %v1685_v53 = vadd.f32 %v1684_v42, %v1515_v41 }
 0x1e1   : > { %3679 = vst [vmem:[%s4152_s27 + $0x80] sm:$0xff] %v3587_v40   ;;  %v2021_v52 = vadd.f32 %v2020_v39, %v1852_v43  ;;  %v3146_v43 = vld [vmem:[%s4054_s19 + $0x380] sm:$0xf] }
 0x1e3   : > { %v2328_v63 = vadd.f32 %v4309_v32, %v2021_v52 }
 0x1e5   : > { %v2392_v2 = vmax.f32 %v2328_v63, 0.0 }
 0x1e6   : > { %v1853_v54 = vpop.f32.mrf.mxu2  ;;  %v1518_v59 = vpop.f32.mrf.mxu0 }
 0x1e7   : > { %v2022_v55 = vpop.f32.mrf.mxu3  ;;  %v1854_v58 = vadd.f32 %v1853_v54, %v1685_v53  ;;  %v1687_v60 = vpop.f32.mrf.mxu1 }
 0x1e8   : > { %v1688_v4 = vadd.f32 %v1687_v60, %v1518_v59  ;;  %v3155_v60 = vor.u32 %v3458_v48, %v3154_v47  ;;  %v3466_v47 = vld [vmem:[%s4054_s19 + $0x3d4] sm:$0xf0]  ;;  %v3464_v48 = vld [vmem:[%s4054_s19 + $0x3cc] sm:$0xf] }
 0x1e9   : > { %v2023_v0 = vadd.f32 %v2022_v55, %v1854_v58  ;;  %1557 = vmatmul.bf16.gmra.mxu0 %v3115_v56  ;;  %v3147_v55 = vor.u32 %v3457_v44, %v3146_v43  ;;  %v3151_v56 = vor.u32 %v3455_v45, %v3148_v46  ;;  %v3465_v43 = vld [vmem:[%s4054_s19 + $0x3cc] sm:$0xf0]  ;;  %v3463_v44 = vld [vmem:[%s4054_s19 + $0x3c4] sm:$0xf]  ;;  %v3180_v45 = vld [vmem:[%s4054_s19 + $0x3d0] sm:$0xf0] }
 0x1ea   : > { %1726 = vmatmul.bf16.gmra.mxu1 %v3119_v57  ;;  %v3186_v46 = vld [vmem:[%s4054_s19 + $0x3c8] sm:$0xf] }
 0x1eb   : > { %v2329_v1 = vadd.f32 %v4309_v32, %v2023_v0  ;;  %1895 = vmatmul.bf16.gmra.mxu2 %v3123_v61  ;;  %v3159_v61 = vor.u32 %v3456_v49, %v3156_v50  ;;  %v3188_v49 = vld [vmem:[%s4054_s19 + $0x3d8] sm:$0xf0] }
 0x1ec   : > { %2064 = vmatmul.bf16.gmra.mxu3 %v3127_v62 }
 0x1ed   : > { %v2393_v3 = vmax.f32 %v2329_v1, 0.0 }
 0x1ee   : > { %v1856_v5 = vpop.f32.mrf.mxu2  ;;  %v1520_v8 = vpop.f32.mrf.mxu0 }
 0x1ef   : > { %v2025_v6 = vpop.f32.mrf.mxu3  ;;  %v3592_v7 = vpack.c.bf16 %v2393_v3, %v2392_v2  ;;  %v1689_v9 = vpop.f32.mrf.mxu1  ;;  %v1857_v10 = vadd.f32 %v1856_v5, %v1688_v4 }
 0x1f0   : > { %v1690_v19 = vadd.f32 %v1689_v9, %v1520_v8 }
 0x1f1   : > { %3680 = vst [vmem:[%s4152_s27 + $0x88] sm:$0xff] %v3592_v7   ;;  %v2026_v18 = vadd.f32 %v2025_v6, %v1857_v10  ;;  %v3162_v10 = vld [vmem:[%s4054_s19 + $0x3a0] sm:$0xf] }
 0x1f3   : > { %v2330_v30 = vadd.f32 %v4309_v32, %v2026_v18 }
 0x1f5   : > { %v2394_v34 = vmax.f32 %v2330_v30, 0.0 }
 0x1f6   : > { %v1858_v20 = vpop.f32.mrf.mxu2  ;;  %v1523_v25 = vpop.f32.mrf.mxu0 }
 0x1f7   : > { %v2027_v21 = vpop.f32.mrf.mxu3  ;;  %v1859_v24 = vadd.f32 %v1858_v20, %v1690_v19  ;;  %v1692_v26 = vpop.f32.mrf.mxu1 }
 0x1f8   : > { %v1693_v36 = vadd.f32 %v1692_v26, %v1523_v25  ;;  %v3171_v26 = vor.u32 %v3462_v29, %v3170_v14  ;;  %v3470_v14 = vld [vmem:[%s4054_s19 + $0x3f4] sm:$0xf0]  ;;  %v3468_v29 = vld [vmem:[%s4054_s19 + $0x3ec] sm:$0xf] }
 0x1f9   : > { %v2028_v31 = vadd.f32 %v2027_v21, %v1859_v24  ;;  %1562 = vmatmul.bf16.gmra.mxu0 %v3131_v22  ;;  %v3163_v21 = vor.u32 %v3461_v11, %v3162_v10  ;;  %v3167_v22 = vor.u32 %v3459_v12, %v3164_v13  ;;  %v3469_v10 = vld [vmem:[%s4054_s19 + $0x3ec] sm:$0xf0]  ;;  %v3467_v11 = vld [vmem:[%s4054_s19 + $0x3e4] sm:$0xf]  ;;  %v3196_v12 = vld [vmem:[%s4054_s19 + $0x3f0] sm:$0xf0] }
 0x1fa   : > { %1731 = vmatmul.bf16.gmra.mxu1 %v3135_v23  ;;  %v3202_v13 = vld [vmem:[%s4054_s19 + $0x3e8] sm:$0xf] }
 0x1fb   : > { %v2331_v33 = vadd.f32 %v4309_v32, %v2028_v31  ;;  %1900 = vmatmul.bf16.gmra.mxu2 %v3139_v27  ;;  %v3175_v27 = vor.u32 %v3460_v15, %v3172_v16  ;;  %v3204_v15 = vld [vmem:[%s4054_s19 + $0x3f8] sm:$0xf0] }
 0x1fc   : > { %2069 = vmatmul.bf16.gmra.mxu3 %v3143_v28 }
 0x1fd   : > { %v2395_v35 = vmax.f32 %v2331_v33, 0.0 }
 0x1fe   : > { %v1861_v37 = vpop.f32.mrf.mxu2  ;;  %v1525_v40 = vpop.f32.mrf.mxu0 }
 0x1ff   : > { %v2030_v38 = vpop.f32.mrf.mxu3  ;;  %v3597_v39 = vpack.c.bf16 %v2395_v35, %v2394_v34  ;;  %v1694_v41 = vpop.f32.mrf.mxu1  ;;  %v1862_v42 = vadd.f32 %v1861_v37, %v1693_v36 }
 0x200   : > { %v1695_v52 = vadd.f32 %v1694_v41, %v1525_v40 }
 0x201   : > { %3681 = vst [vmem:[%s4152_s27 + $0x90] sm:$0xff] %v3597_v39   ;;  %v2031_v51 = vadd.f32 %v2030_v38, %v1862_v42  ;;  %v3178_v42 = vld [vmem:[%s4054_s19 + $0x3c0] sm:$0xf] }
 0x203   : > { %v2332_v62 = vadd.f32 %v4309_v32, %v2031_v51 }
 0x205   : > { %v2396_v1 = vmax.f32 %v2332_v62, 0.0 }
 0x206   : > { %v1863_v53 = vpop.f32.mrf.mxu2  ;;  %v1528_v58 = vpop.f32.mrf.mxu0 }
 0x207   : > { %v2032_v54 = vpop.f32.mrf.mxu3  ;;  %v1864_v57 = vadd.f32 %v1863_v53, %v1695_v52  ;;  %v1697_v59 = vpop.f32.mrf.mxu1 }
 0x208   : > { %v1698_v3 = vadd.f32 %v1697_v59, %v1528_v58  ;;  %v3187_v59 = vor.u32 %v3466_v47, %v3186_v46 }
 0x209   : > { %v2033_v63 = vadd.f32 %v2032_v54, %v1864_v57  ;;  %1567 = vmatmul.bf16.gmra.mxu0 %v3147_v55  ;;  %v3179_v54 = vor.u32 %v3465_v43, %v3178_v42  ;;  %v3183_v55 = vor.u32 %v3463_v44, %v3180_v45 }
 0x20a   : > { %1736 = vmatmul.bf16.gmra.mxu1 %v3151_v56 }
 0x20b   : > { %v2333_v0 = vadd.f32 %v4309_v32, %v2033_v63  ;;  %1905 = vmatmul.bf16.gmra.mxu2 %v3155_v60  ;;  %v3191_v60 = vor.u32 %v3464_v48, %v3188_v49 }
 0x20c   : > { %2074 = vmatmul.bf16.gmra.mxu3 %v3159_v61 }
 0x20d   : > { %v2397_v2 = vmax.f32 %v2333_v0, 0.0 }
 0x20e   : > { %v1866_v4 = vpop.f32.mrf.mxu2  ;;  %v1530_v7 = vpop.f32.mrf.mxu0 }
 0x20f   : > { %v2035_v5 = vpop.f32.mrf.mxu3  ;;  %v3602_v6 = vpack.c.bf16 %v2397_v2, %v2396_v1  ;;  %v1699_v8 = vpop.f32.mrf.mxu1  ;;  %v1867_v9 = vadd.f32 %v1866_v4, %v1698_v3 }
 0x210   : > { %v1700_v18 = vadd.f32 %v1699_v8, %v1530_v7 }
 0x211   : > { %3682 = vst [vmem:[%s4152_s27 + $0x98] sm:$0xff] %v3602_v6   ;;  %v2036_v17 = vadd.f32 %v2035_v5, %v1867_v9  ;;  %v3194_v9 = vld [vmem:[%s4054_s19 + $0x3e0] sm:$0xf]  ;;  %s3856_s19 = scalar_lea.hbm %s4471_s3, 512 }
 0x212   : > { %p3858_p12 = scmp.lt.s32.totalorder %s3856_s19, %s3852_s4 }
 0x213   : > { %v2334_v28 = vadd.f32 %v4309_v32, %v2036_v17 }
 0x214   : > { %p3859_p13 = por %p3858_p12, %p3857_p10 }
 0x215   : > { %v2398_v33 = vmax.f32 %v2334_v28, 0.0 }
 0x216   : > { %v1868_v19 = vpop.f32.mrf.mxu2  ;;  %v1533_v24 = vpop.f32.mrf.mxu0  ;;  %p3860_p0 = pnand %p3859_p13, %p3855_p8 }
 0x217   : > { %v2037_v20 = vpop.f32.mrf.mxu3  ;;  %v1869_v23 = vadd.f32 %v1868_v19, %v1700_v18  ;;  %v1702_v25 = vpop.f32.mrf.mxu1 }
 0x218   : > { %v1703_v35 = vadd.f32 %v1702_v25, %v1533_v24  ;;  %v3203_v25 = vor.u32 %v3470_v14, %v3202_v13 }
 0x219   : > { %v2038_v30 = vadd.f32 %v2037_v20, %v1869_v23  ;;  %1572 = vmatmul.bf16.gmra.mxu0 %v3163_v21  ;;  %v3195_v20 = vor.u32 %v3469_v10, %v3194_v9  ;;  %v3199_v21 = vor.u32 %v3467_v11, %v3196_v12 }
 0x21a   : > { %1741 = vmatmul.bf16.gmra.mxu1 %v3167_v22 }
 0x21b   : > { %v2335_v31 = vadd.f32 %v4309_v32, %v2038_v30  ;;  %1910 = vmatmul.bf16.gmra.mxu2 %v3171_v26  ;;  %v3207_v26 = vor.u32 %v3468_v29, %v3204_v15 }
 0x21c   : > { %2079 = vmatmul.bf16.gmra.mxu3 %v3175_v27 }
 0x21d   : > { %v2399_v34 = vmax.f32 %v2335_v31, 0.0 }
 0x21e   : > { %v1871_v36 = vpop.f32.mrf.mxu2  ;;  %v1535_v39 = vpop.f32.mrf.mxu0 }
 0x21f   : > { %v2040_v37 = vpop.f32.mrf.mxu3  ;;  %v3607_v38 = vpack.c.bf16 %v2399_v34, %v2398_v33  ;;  %v1704_v40 = vpop.f32.mrf.mxu1  ;;  %v1872_v41 = vadd.f32 %v1871_v36, %v1703_v35 }
 0x220   : > { %v1705_v51 = vadd.f32 %v1704_v40, %v1535_v39 }
 0x221   : > { %3683 = vst [vmem:[%s4152_s27 + $0xa0] sm:$0xff] %v3607_v38   ;;  %v2041_v50 = vadd.f32 %v2040_v37, %v1872_v41 }
 0x223   : > { %v2336_v61 = vadd.f32 %v4309_v32, %v2041_v50 }
 0x225   : > { %v2400_v0 = vmax.f32 %v2336_v61, 0.0 }
 0x226   : > { %v1873_v52 = vpop.f32.mrf.mxu2  ;;  %v1538_v57 = vpop.f32.mrf.mxu0 }
 0x227   : > { %v2042_v53 = vpop.f32.mrf.mxu3  ;;  %v1874_v56 = vadd.f32 %v1873_v52, %v1705_v51  ;;  %v1707_v58 = vpop.f32.mrf.mxu1 }
 0x228   : > { %v1708_v2 = vadd.f32 %v1707_v58, %v1538_v57 }
 0x229   : > { %v2043_v62 = vadd.f32 %v2042_v53, %v1874_v56  ;;  %1577 = vmatmul.bf16.gmra.mxu0 %v3179_v54 }
 0x22a   : > { %1746 = vmatmul.bf16.gmra.mxu1 %v3183_v55 }
 0x22b   : > { %v2337_v63 = vadd.f32 %v4309_v32, %v2043_v62  ;;  %1915 = vmatmul.bf16.gmra.mxu2 %v3187_v59 }
 0x22c   : > { %2084 = vmatmul.bf16.gmra.mxu3 %v3191_v60 }
 0x22d   : > { %v2401_v1 = vmax.f32 %v2337_v63, 0.0 }
 0x22e   : > { %v1876_v3 = vpop.f32.mrf.mxu2  ;;  %v1540_v6 = vpop.f32.mrf.mxu0 }
 0x22f   : > { %v2045_v4 = vpop.f32.mrf.mxu3  ;;  %v3612_v5 = vpack.c.bf16 %v2401_v1, %v2400_v0  ;;  %v1709_v7 = vpop.f32.mrf.mxu1  ;;  %v1877_v8 = vadd.f32 %v1876_v3, %v1708_v2 }
 0x230   : > { %v1710_v17 = vadd.f32 %v1709_v7, %v1540_v6 }
 0x231   : > { %3684 = vst [vmem:[%s4152_s27 + $0xa8] sm:$0xff] %v3612_v5   ;;  %v2046_v16 = vadd.f32 %v2045_v4, %v1877_v8 }
 0x233   : > { %v2338_v27 = vadd.f32 %v4309_v32, %v2046_v16 }
 0x235   : > { %v2402_v31 = vmax.f32 %v2338_v27, 0.0 }
 0x236   : > { %v1878_v18 = vpop.f32.mrf.mxu2  ;;  %v1543_v23 = vpop.f32.mrf.mxu0 }
 0x237   : > { %v2047_v19 = vpop.f32.mrf.mxu3  ;;  %v1879_v22 = vadd.f32 %v1878_v18, %v1710_v17  ;;  %v1712_v24 = vpop.f32.mrf.mxu1 }
 0x238   : > { %v1713_v34 = vadd.f32 %v1712_v24, %v1543_v23 }
 0x239   : > { %v2048_v28 = vadd.f32 %v2047_v19, %v1879_v22  ;;  %1582 = vmatmul.bf16.gmra.mxu0 %v3195_v20 }
 0x23a   : > { %1751 = vmatmul.bf16.gmra.mxu1 %v3199_v21 }
 0x23b   : > { %v2339_v30 = vadd.f32 %v4309_v32, %v2048_v28  ;;  %1920 = vmatmul.bf16.gmra.mxu2 %v3203_v25 }
 0x23c   : > { %2089 = vmatmul.bf16.gmra.mxu3 %v3207_v26 }
 0x23d   : > { %v2403_v33 = vmax.f32 %v2339_v30, 0.0 }
 0x23e   : > { %v1881_v35 = vpop.f32.mrf.mxu2  ;;  %v1545_v38 = vpop.f32.mrf.mxu0 }
 0x23f   : > { %v2050_v36 = vpop.f32.mrf.mxu3  ;;  %v3617_v37 = vpack.c.bf16 %v2403_v33, %v2402_v31  ;;  %v1714_v39 = vpop.f32.mrf.mxu1  ;;  %v1882_v40 = vadd.f32 %v1881_v35, %v1713_v34 }
 0x240   : > { %v1715_v42 = vadd.f32 %v1714_v39, %v1545_v38 }
 0x241   : > { %3685 = vst [vmem:[%s4152_s27 + $0xb0] sm:$0xff] %v3617_v37   ;;  %v2051_v41 = vadd.f32 %v2050_v36, %v1882_v40 }
 0x243   : > { %v2340_v48 = vadd.f32 %v4309_v32, %v2051_v41 }
 0x245   : > { %v2404_v51 = vmax.f32 %v2340_v48, 0.0 }
 0x246   : > { %v1883_v43 = vpop.f32.mrf.mxu2  ;;  %v1548_v46 = vpop.f32.mrf.mxu0 }
 0x247   : > { %v2052_v44 = vpop.f32.mrf.mxu3  ;;  %v1884_v45 = vadd.f32 %v1883_v43, %v1715_v42  ;;  %v1717_v47 = vpop.f32.mrf.mxu1 }
 0x248   : > { %v1718_v53 = vadd.f32 %v1717_v47, %v1548_v46 }
 0x249   : > { %v2053_v49 = vadd.f32 %v2052_v44, %v1884_v45 }
 0x24b   : > { %v2341_v50 = vadd.f32 %v4309_v32, %v2053_v49 }
 0x24d   : > { %v2405_v52 = vmax.f32 %v2341_v50, 0.0 }
 0x24e   : > { %v1886_v54 = vpop.f32.mrf.mxu2  ;;  %v1550_v57 = vpop.f32.mrf.mxu0 }
 0x24f   : > { %v2055_v55 = vpop.f32.mrf.mxu3  ;;  %v3622_v56 = vpack.c.bf16 %v2405_v52, %v2404_v51  ;;  %v1719_v58 = vpop.f32.mrf.mxu1  ;;  %v1887_v59 = vadd.f32 %v1886_v54, %v1718_v53 }
 0x250   : > { %v1720_v61 = vadd.f32 %v1719_v58, %v1550_v57 }
 0x251   : > { %3686 = vst [vmem:[%s4152_s27 + $0xb8] sm:$0xff] %v3622_v56   ;;  %v2056_v60 = vadd.f32 %v2055_v55, %v1887_v59 }
 0x253   : > { %v2342_v3 = vadd.f32 %v4309_v32, %v2056_v60 }
 0x255   : > { %v2406_v6 = vmax.f32 %v2342_v3, 0.0 }
 0x256   : > { %v1888_v62 = vpop.f32.mrf.mxu2  ;;  %v1553_v1 = vpop.f32.mrf.mxu0 }
 0x257   : > { %v2057_v63 = vpop.f32.mrf.mxu3  ;;  %v1889_v0 = vadd.f32 %v1888_v62, %v1720_v61  ;;  %v1722_v2 = vpop.f32.mrf.mxu1 }
 0x258   : > { %v1723_v8 = vadd.f32 %v1722_v2, %v1553_v1 }
 0x259   : > { %v2058_v4 = vadd.f32 %v2057_v63, %v1889_v0 }
 0x25b   : > { %v2343_v5 = vadd.f32 %v4309_v32, %v2058_v4 }
 0x25d   : > { %v2407_v7 = vmax.f32 %v2343_v5, 0.0 }
 0x25e   : > { %v1891_v9 = vpop.f32.mrf.mxu2  ;;  %v1555_v12 = vpop.f32.mrf.mxu0 }
 0x25f   : > { %v2060_v10 = vpop.f32.mrf.mxu3  ;;  %v3627_v11 = vpack.c.bf16 %v2407_v7, %v2406_v6  ;;  %v1724_v13 = vpop.f32.mrf.mxu1  ;;  %v1892_v14 = vadd.f32 %v1891_v9, %v1723_v8 }
 0x260   : > { %v1725_v15 = vadd.f32 %v1724_v13, %v1555_v12 }
 0x261   : > { %3687 = vst [vmem:[%s4152_s27 + $0xc0] sm:$0xff] %v3627_v11   ;;  %v2061_v29 = vadd.f32 %v2060_v10, %v1892_v14 }
 0x263   : > { %v2344_v21 = vadd.f32 %v4309_v32, %v2061_v29 }
 0x265   : > { %v2408_v24 = vmax.f32 %v2344_v21, 0.0 }
 0x266   : > { %v1893_v16 = vpop.f32.mrf.mxu2  ;;  %v1558_v19 = vpop.f32.mrf.mxu0 }
 0x267   : > { %v2062_v17 = vpop.f32.mrf.mxu3  ;;  %v1894_v18 = vadd.f32 %v1893_v16, %v1725_v15  ;;  %v1727_v20 = vpop.f32.mrf.mxu1 }
 0x268   : > { %v1728_v26 = vadd.f32 %v1727_v20, %v1558_v19 }
 0x269   : > { %v2063_v22 = vadd.f32 %v2062_v17, %v1894_v18 }
 0x26b   : > { %v2345_v23 = vadd.f32 %v4309_v32, %v2063_v22 }
 0x26d   : > { %v2409_v25 = vmax.f32 %v2345_v23, 0.0 }
 0x26e   : > { %v1896_v27 = vpop.f32.mrf.mxu2  ;;  %v1560_v31 = vpop.f32.mrf.mxu0 }
 0x26f   : > { %v2065_v28 = vpop.f32.mrf.mxu3  ;;  %v3632_v30 = vpack.c.bf16 %v2409_v25, %v2408_v24  ;;  %v1729_v33 = vpop.f32.mrf.mxu1  ;;  %v1897_v34 = vadd.f32 %v1896_v27, %v1728_v26 }
 0x270   : > { %v1730_v36 = vadd.f32 %v1729_v33, %v1560_v31 }
 0x271   : > { %3688 = vst [vmem:[%s4152_s27 + $0xc8] sm:$0xff] %v3632_v30   ;;  %v2066_v35 = vadd.f32 %v2065_v28, %v1897_v34 }
 0x273   : > { %v2346_v42 = vadd.f32 %v4309_v32, %v2066_v35 }
 0x275   : > { %v2410_v45 = vmax.f32 %v2346_v42, 0.0 }
 0x276   : > { %v1898_v37 = vpop.f32.mrf.mxu2  ;;  %v1563_v40 = vpop.f32.mrf.mxu0 }
 0x277   : > { %v2067_v38 = vpop.f32.mrf.mxu3  ;;  %v1899_v39 = vadd.f32 %v1898_v37, %v1730_v36  ;;  %v1732_v41 = vpop.f32.mrf.mxu1 }
 0x278   : > { %v1733_v47 = vadd.f32 %v1732_v41, %v1563_v40 }
 0x279   : > { %v2068_v43 = vadd.f32 %v2067_v38, %v1899_v39 }
 0x27b   : > { %v2347_v44 = vadd.f32 %v4309_v32, %v2068_v43 }
 0x27d   : > { %v2411_v46 = vmax.f32 %v2347_v44, 0.0 }
 0x27e   : > { %v1901_v48 = vpop.f32.mrf.mxu2  ;;  %v1565_v51 = vpop.f32.mrf.mxu0 }
 0x27f   : > { %v2070_v49 = vpop.f32.mrf.mxu3  ;;  %v3637_v50 = vpack.c.bf16 %v2411_v46, %v2410_v45  ;;  %v1734_v52 = vpop.f32.mrf.mxu1  ;;  %v1902_v53 = vadd.f32 %v1901_v48, %v1733_v47 }
 0x280   : > { %v1735_v55 = vadd.f32 %v1734_v52, %v1565_v51 }
 0x281   : > { %3689 = vst [vmem:[%s4152_s27 + $0xd0] sm:$0xff] %v3637_v50   ;;  %v2071_v54 = vadd.f32 %v2070_v49, %v1902_v53 }
 0x283   : > { %v2348_v61 = vadd.f32 %v4309_v32, %v2071_v54 }
 0x285   : > { %v2412_v0 = vmax.f32 %v2348_v61, 0.0 }
 0x286   : > { %v1903_v56 = vpop.f32.mrf.mxu2  ;;  %v1568_v59 = vpop.f32.mrf.mxu0 }
 0x287   : > { %v2072_v57 = vpop.f32.mrf.mxu3  ;;  %v1904_v58 = vadd.f32 %v1903_v56, %v1735_v55  ;;  %v1737_v60 = vpop.f32.mrf.mxu1 }
 0x288   : > { %v1738_v2 = vadd.f32 %v1737_v60, %v1568_v59 }
 0x289   : > { %v2073_v62 = vadd.f32 %v2072_v57, %v1904_v58 }
 0x28b   : > { %v2349_v63 = vadd.f32 %v4309_v32, %v2073_v62 }
 0x28d   : > { %v2413_v1 = vmax.f32 %v2349_v63, 0.0 }
 0x28e   : > { %v1906_v3 = vpop.f32.mrf.mxu2  ;;  %v1570_v6 = vpop.f32.mrf.mxu0 }
 0x28f   : > { %v2075_v4 = vpop.f32.mrf.mxu3  ;;  %v3642_v5 = vpack.c.bf16 %v2413_v1, %v2412_v0  ;;  %v1739_v7 = vpop.f32.mrf.mxu1  ;;  %v1907_v8 = vadd.f32 %v1906_v3, %v1738_v2 }
 0x290   : > { %v1740_v10 = vadd.f32 %v1739_v7, %v1570_v6 }
 0x291   : > { %3690 = vst [vmem:[%s4152_s27 + $0xd8] sm:$0xff] %v3642_v5   ;;  %v2076_v9 = vadd.f32 %v2075_v4, %v1907_v8 }
 0x293   : > { %v2350_v15 = vadd.f32 %v4309_v32, %v2076_v9 }
 0x295   : > { %v2414_v18 = vmax.f32 %v2350_v15, 0.0 }
 0x296   : > { %v1908_v11 = vpop.f32.mrf.mxu2  ;;  %v1573_v14 = vpop.f32.mrf.mxu0 }
 0x297   : > { %v2077_v12 = vpop.f32.mrf.mxu3  ;;  %v1909_v13 = vadd.f32 %v1908_v11, %v1740_v10  ;;  %v1742_v29 = vpop.f32.mrf.mxu1 }
 0x298   : > { %v1743_v20 = vadd.f32 %v1742_v29, %v1573_v14 }
 0x299   : > { %v2078_v16 = vadd.f32 %v2077_v12, %v1909_v13 }
 0x29b   : > { %v2351_v17 = vadd.f32 %v4309_v32, %v2078_v16 }
 0x29d   : > { %v2415_v19 = vmax.f32 %v2351_v17, 0.0 }
 0x29e   : > { %v1911_v21 = vpop.f32.mrf.mxu2  ;;  %v1575_v24 = vpop.f32.mrf.mxu0 }
 0x29f   : > { %v2080_v22 = vpop.f32.mrf.mxu3  ;;  %v3647_v23 = vpack.c.bf16 %v2415_v19, %v2414_v18  ;;  %v1744_v25 = vpop.f32.mrf.mxu1  ;;  %v1912_v26 = vadd.f32 %v1911_v21, %v1743_v20 }
 0x2a0   : > { %v1745_v28 = vadd.f32 %v1744_v25, %v1575_v24 }
 0x2a1   : > { %3691 = vst [vmem:[%s4152_s27 + $0xe0] sm:$0xff] %v3647_v23   ;;  %v2081_v27 = vadd.f32 %v2080_v22, %v1912_v26 }
 0x2a3   : > { %v2352_v36 = vadd.f32 %v4309_v32, %v2081_v27 }
 0x2a5   : > { %v2416_v39 = vmax.f32 %v2352_v36, 0.0 }
 0x2a6   : > { %v1913_v30 = vpop.f32.mrf.mxu2  ;;  %v1578_v34 = vpop.f32.mrf.mxu0 }
 0x2a7   : > { %v2082_v31 = vpop.f32.mrf.mxu3  ;;  %v1914_v33 = vadd.f32 %v1913_v30, %v1745_v28  ;;  %v1747_v35 = vpop.f32.mrf.mxu1 }
 0x2a8   : > { %v1748_v41 = vadd.f32 %v1747_v35, %v1578_v34 }
 0x2a9   : > { %v2083_v37 = vadd.f32 %v2082_v31, %v1914_v33 }
 0x2ab   : > { %v2353_v38 = vadd.f32 %v4309_v32, %v2083_v37 }
 0x2ad   : > { %v2417_v40 = vmax.f32 %v2353_v38, 0.0 }
 0x2ae   : > { %v1916_v42 = vpop.f32.mrf.mxu2  ;;  %v1580_v45 = vpop.f32.mrf.mxu0 }
 0x2af   : > { %v2085_v43 = vpop.f32.mrf.mxu3  ;;  %v3652_v44 = vpack.c.bf16 %v2417_v40, %v2416_v39  ;;  %v1749_v46 = vpop.f32.mrf.mxu1  ;;  %v1917_v47 = vadd.f32 %v1916_v42, %v1748_v41 }
 0x2b0   : > { %v1750_v49 = vadd.f32 %v1749_v46, %v1580_v45 }
 0x2b1   : > { %3692 = vst [vmem:[%s4152_s27 + $0xe8] sm:$0xff] %v3652_v44   ;;  %v2086_v48 = vadd.f32 %v2085_v43, %v1917_v47 }
 0x2b3   : > { %v2354_v55 = vadd.f32 %v4309_v32, %v2086_v48 }
 0x2b5   : > { %v2418_v58 = vmax.f32 %v2354_v55, 0.0 }
 0x2b6   : > { %v1918_v50 = vpop.f32.mrf.mxu2  ;;  %v1583_v53 = vpop.f32.mrf.mxu0 }
 0x2b7   : > { %v2087_v51 = vpop.f32.mrf.mxu3  ;;  %v1919_v52 = vadd.f32 %v1918_v50, %v1750_v49  ;;  %v1752_v54 = vpop.f32.mrf.mxu1 }
 0x2b8   : > { %v1753_v60 = vadd.f32 %v1752_v54, %v1583_v53 }
 0x2b9   : > { %v2088_v56 = vadd.f32 %v2087_v51, %v1919_v52 }
 0x2bb   : > { %v2355_v57 = vadd.f32 %v4309_v32, %v2088_v56 }
 0x2bd   : > { %v2419_v59 = vmax.f32 %v2355_v57, 0.0 }
 0x2be   : > { %v1921_v61 = vpop.f32.mrf.mxu2  ;;  %v1585_v1 = vpop.f32.mrf.mxu0 }
 0x2bf   : > { %v2090_v62 = vpop.f32.mrf.mxu3  ;;  %v3657_v63 = vpack.c.bf16 %v2419_v59, %v2418_v58  ;;  %v1922_v0 = vadd.f32 %v1921_v61, %v1753_v60  ;;  %v1754_v2 = vpop.f32.mrf.mxu1 }
 0x2c0   : > { %v1755_v4 = vadd.f32 %v1754_v2, %v1585_v1 }
 0x2c1   : > { %3693 = vst [vmem:[%s4152_s27 + $0xf0] sm:$0xff] %v3657_v63   ;;  %v2091_v3 = vadd.f32 %v2090_v62, %v1922_v0 }
 0x2c3   : > { %v2356_v8 = vadd.f32 %v4309_v32, %v2091_v3 }
 0x2c5   : > { %v2420_v11 = vmax.f32 %v2356_v8, 0.0 }
 0x2c6   : > { %v1923_v5 = vpop.f32.mrf.mxu2 }
 0x2c7   : > { %v1924_v6 = vadd.f32 %v1923_v5, %v1755_v4  ;;  %v2092_v7 = vpop.f32.mrf.mxu3 }
 0x2c9   : > { %v2093_v9 = vadd.f32 %v2092_v7, %v1924_v6 }
 0x2cb   : > { %v2357_v10 = vadd.f32 %v4309_v32, %v2093_v9 }
 0x2cd   : > { %v2421_v12 = vmax.f32 %v2357_v10, 0.0 }
 0x2cf   : > { %v3662_v13 = vpack.c.bf16 %v2421_v12, %v2420_v11 }
 0x2d1   : > { %3694 = vst [vmem:[%s4152_s27 + $0xf8] sm:$0xff] %v3662_v13  }
 0x2d2   : > { %3863 = shalt.err (!%p3860_p0)
}
 0x2d3   : > { %s3929_s6 = smov 64   ;;  %s3930_s22 = smov 4  }
 0x2d4   : > { %3701 = dma.vmem_to_hbm [thread:$0]  (%p4030_p5), %s2565_s29, 4096, %s2567_s21, %s2551_s15, %s3929_s6, %s3929_s6, %s3930_s22  }
 0x2d5 PF: > { %s2581_s27 = sand.u32 1, %s3902_s12   ;;  %p3712_p3 = pnand %p2687_p11, %p4000_p6 }
 0x2d6   : > { %s2582_s7 = scalar_lea.sflag [#allocation5], %s2581_s27 }
 0x2d7   : > { %p3713_p7 = pneg %p3712_p3 }
 0x2d9   : > { %3897 = dma.done.wait (%p3713_p7), %s2582_s7, 4096  }
 0x2da   : > { %3899 = vsyncadd (%p3713_p7), %s2582_s7, 4294963200  ;;  %s20_s17 = sadd.s32 1, %s3922_s17   ;;  %s4481_s12 = smov %s3906_s13 }
 0x2db   : > { %p17_p9 = scmp.ge.s32.totalorder %s20_s17, 4   ;;  %s4482_s13 = smov %s3910_s14 }
 0x2dc   : > { %s4483_s14 = smov %s4039_s18  ;;  %s4484_s15 = smov %s3918_s16 }
 0x2dd   : > { %s4485_s16 = smov %s4487_s5  ;;  %19 = sbr.rel (!%p17_p9) target bundleno = 9 (0x9), region = 93 }
 0x2e2   :  { %2588 = vsyncpa [#allocation4], 1 }
 0x2e3   :  { %2590 = vsyncpa [#allocation4 + $0x1], 1 }
 0x2e4   :  { %2591 = vsyncpa [#allocation7], 1 }
 0x2e5   :  { %2592 = vsyncpa [#allocation5], 1 }
 0x2e6   :  { %2594 = vsyncpa [#allocation5 + $0x1], 1 }

</bundles_post_ra>
